<compile_context>
chip_gen: v7x
topology: tpu7x:2x2x1
jax: 0.10.0
libtpu: 0.0.40
codegen_flags: <defaults>
</compile_context>

<pallas_src>
import jax
import jax.numpy as jnp
from jax.experimental import pallas as pl
from jax.experimental.pallas import tpu as pltpu


def _model_kernel(
    x_ref,        # (T*Bb, F)  time-major-within-block flat input
    wf_ref,       # (F, F)     feature_map weight, transposed
    bf_ref,       # (1, F)
    wih_ref,      # (F, 4H)    LSTM input weights, transposed, gate order (i,f,o,g)
    whh_ref,      # (H, 4H)    LSTM hidden weights, transposed, gate order (i,f,o,g)
    b_ref,        # (1, 4H)    combined bias b_ih + b_hh, gate order (i,f,o,g)
    wattn_ref,    # (H, H)     attention Linear weight, transposed
    battn_ref,    # (1, H)
    attnu_ref,    # (1, H)     attention context vector (row)
    wfc1_ref,     # (1, H)     fc weight, first H columns (for last hidden)
    wfc2_ref,     # (1, H)     fc weight, last H columns (for weighted sum)
    bfc_ref,      # (1, 1)
    y_ref,        # (Bb, 1)    output logits
    feat_ref,     # (Bb, 2H)   output feature
    lstm_out_ref, # scratch (T*Bb, H)
):
    TB, _F = x_ref.shape
    H = whh_ref.shape[0]
    Bb = y_ref.shape[0]
    T = TB // Bb

    # ---- feature map + tanh (one well-shaped MXU matmul) ----
    xm = jnp.tanh(
        jnp.dot(x_ref[...], wf_ref[...], preferred_element_type=jnp.float32)
        + bf_ref[...]
    )                                                    # (T*Bb, F)

    # ---- hoisted LSTM input projection (+ combined bias), one big matmul ----
    x_proj = (
        jnp.dot(xm, wih_ref[...], preferred_element_type=jnp.float32)
        + b_ref[...]
    )                                                    # (T*Bb, 4H)

    # ---- LSTM recurrence (fully unrolled, only h @ W_hh on the serial path) ----
    whh = whh_ref[...]
    h = jnp.zeros((Bb, H), jnp.float32)
    c = jnp.zeros((Bb, H), jnp.float32)
    for t in range(T):
        gates = x_proj[t * Bb:(t + 1) * Bb, :] + jnp.dot(
            h, whh, preferred_element_type=jnp.float32)  # (Bb, 4H)
        ifo = jax.nn.sigmoid(gates[:, :3 * H])           # one EUP pass for i, f, o
        g = jnp.tanh(gates[:, 3 * H:])                   # one EUP pass for g
        i_g = ifo[:, 0 * H:1 * H]
        f_g = ifo[:, 1 * H:2 * H]
        o_g = ifo[:, 2 * H:3 * H]
        c = f_g * c + i_g * g
        h = o_g * jnp.tanh(c)
        lstm_out_ref[t * Bb:(t + 1) * Bb, :] = h

    lo = lstm_out_ref[...]                               # (T*Bb, H)

    # ---- attention: Linear + tanh, score via lane reduce (no N=1 matmul) ----
    aw = jnp.tanh(
        jnp.dot(lo, wattn_ref[...], preferred_element_type=jnp.float32)
        + battn_ref[...]
    )                                                    # (T*Bb, H)
    score = jnp.sum(aw * attnu_ref[...], axis=-1, keepdims=True)   # (T*Bb, 1)

    # ---- softmax over time, kept in flat layout with static per-t slices ----
    s_chunks = [score[t * Bb:(t + 1) * Bb, :] for t in range(T)]   # each (Bb, 1)
    m = s_chunks[0]
    for t in range(1, T):
        m = jnp.maximum(m, s_chunks[t])
    e_chunks = [jnp.exp(s - m) for s in s_chunks]
    denom = e_chunks[0]
    for t in range(1, T):
        denom = denom + e_chunks[t]
    inv = 1.0 / denom                                    # exact (tiny, off hot path)

    # ---- attention-weighted sum over time ----
    ws = jnp.zeros((Bb, H), jnp.float32)
    for t in range(T):
        ws = ws + (e_chunks[t] * inv) * lo[t * Bb:(t + 1) * Bb, :]

    # ---- feature = [last hidden | weighted sum] written directly (no concat) ----
    feat_ref[:, :H] = h
    feat_ref[:, H:] = ws

    # ---- fc(2H -> 1) as a VPU lane reduce ----
    y_ref[...] = (
        jnp.sum(h * wfc1_ref[...] + ws * wfc2_ref[...], axis=-1, keepdims=True)
        + bfc_ref[...]
    )


def _reorder_gates_ifog(w):
    """Permute PyTorch LSTM gate blocks (i, f, g, o) -> (i, f, o, g) along axis 0."""
    i, f, g, o = jnp.split(w, 4, axis=0)
    return jnp.concatenate([i, f, o, g], axis=0)


def model_forward(x, params, *, batch_block=None):
    """x: (B, T, F) batch-first, like the PyTorch module.

    Returns (y (B,), feature (B, 2H))."""
    B, T, F = x.shape
    H = params["w_hh"].shape[1]            # w_hh: (4H, H)
    H4 = 4 * H

    if batch_block is None:
        batch_block = B if B <= 8 or B % 8 != 0 else 8
    assert B % batch_block == 0, "batch must be divisible by batch_block"
    Bb = batch_block
    n_blocks = B // Bb

    # ---- input: time-major flat within each batch block: (n_blocks, T*Bb, F) ----
    x_tm = jnp.transpose(x, (1, 0, 2))                          # (T, B, F)
    x_blk = (x_tm.reshape(T, n_blocks, Bb, F)
                 .transpose(1, 0, 2, 3)
                 .reshape(n_blocks, T * Bb, F))

    # ---- weights: pre-transpose, reorder gates, fold the two LSTM biases ----
    wf_t = params["w_f"].T                                      # (F, F)
    bf = params["b_f"].reshape(1, F)
    wih_t = _reorder_gates_ifog(params["w_ih"]).T               # (F, 4H)
    whh_t = _reorder_gates_ifog(params["w_hh"]).T               # (H, 4H)
    b_row = _reorder_gates_ifog(
        (params["b_ih"] + params["b_hh"]).reshape(H4, 1)).reshape(1, H4)
    wattn_t = params["w_attn"].T                                # (H, H)
    battn = params["b_attn"].reshape(1, H)
    attnu_row = params["attn_u"].reshape(1, H)                  # (1, H)
    wfc1 = params["w_fc"][:, :H]                                # (1, H)
    wfc2 = params["w_fc"][:, H:]                                # (1, H)
    bfc = params["b_fc"].reshape(1, 1)

    grid = (n_blocks,)
    full = lambda shape: pl.BlockSpec(shape, lambda g: (0,) * len(shape))

    y_blk, feat_blk = pl.pallas_call(
        _model_kernel,
        out_shape=(
            jax.ShapeDtypeStruct((n_blocks, Bb, 1), jnp.float32),
            jax.ShapeDtypeStruct((n_blocks, Bb, 2 * H), jnp.float32),
        ),
        grid=grid,
        in_specs=[
            pl.BlockSpec((None, T * Bb, F), lambda g: (g, 0, 0)),   # x (per batch block)
            full((F, F)),                                           # wf
            full((1, F)),                                           # bf
            full((F, H4)),                                          # wih
            full((H, H4)),                                          # whh
            full((1, H4)),                                          # combined bias
            full((H, H)),                                           # wattn
            full((1, H)),                                           # battn
            full((1, H)),                                           # attn_u row
            full((1, H)),                                           # wfc (first half)
            full((1, H)),                                           # wfc (second half)
            full((1, 1)),                                           # bfc
        ],
        out_specs=(
            pl.BlockSpec((None, Bb, 1), lambda g: (g, 0, 0)),
            pl.BlockSpec((None, Bb, 2 * H), lambda g: (g, 0, 0)),
        ),
        scratch_shapes=[pltpu.VMEM((T * Bb, H), jnp.float32)],
        compiler_params=pltpu.CompilerParams(
            dimension_semantics=("parallel",)),
    )(x_blk, wf_t, bf, wih_t, whh_t, b_row, wattn_t, battn,
      attnu_row, wfc1, wfc2, bfc)

    y = y_blk.reshape(B, 1)[:, 0]
    feature = feat_blk.reshape(B, 2 * H)
    return y, feature


def _reference_forward(x, params):
    """Pure-JAX reference mirroring the PyTorch forward, for verification."""
    B, T, F = x.shape
    H = params["w_hh"].shape[1]
    xm = jnp.tanh(x @ params["w_f"].T + params["b_f"])
    h = jnp.zeros((B, H), jnp.float32)
    c = jnp.zeros((B, H), jnp.float32)
    outs = []
    for t in range(T):
        gates = xm[:, t, :] @ params["w_ih"].T + h @ params["w_hh"].T \
                + params["b_ih"] + params["b_hh"]
        i = jax.nn.sigmoid(gates[:, 0 * H:1 * H])
        f = jax.nn.sigmoid(gates[:, 1 * H:2 * H])
        g = jnp.tanh(gates[:, 2 * H:3 * H])
        o = jax.nn.sigmoid(gates[:, 3 * H:4 * H])
        c = f * c + i * g
        h = o * jnp.tanh(c)
        outs.append(h)
    lstm_out = jnp.stack(outs, axis=1)                       # (B, T, H)
    aw = jnp.tanh(lstm_out @ params["w_attn"].T + params["b_attn"])
    score = (aw @ params["attn_u"])[..., 0]                  # (B, T)
    w = jax.nn.softmax(score, axis=1)
    weighted_sum = jnp.sum(lstm_out * w[:, :, None], axis=1)
    feature = jnp.concatenate([lstm_out[:, -1, :], weighted_sum], axis=1)
    y = (feature @ params["w_fc"].T + params["b_fc"])[:, 0]
    return y, feature


def make_params(key, num_features=10, num_hidden=32):
    F, H = num_features, num_hidden
    ks = jax.random.split(key, 11)
    s = 0.1
    return {
        "w_f":    s * jax.random.normal(ks[0], (F, F), jnp.float32),
        "b_f":    s * jax.random.normal(ks[1], (F,), jnp.float32),
        "w_ih":   s * jax.random.normal(ks[2], (4 * H, F), jnp.float32),
        "w_hh":   s * jax.random.normal(ks[3], (4 * H, H), jnp.float32),
        "b_ih":   s * jax.random.normal(ks[4], (4 * H,), jnp.float32),
        "b_hh":   s * jax.random.normal(ks[5], (4 * H,), jnp.float32),
        "w_attn": s * jax.random.normal(ks[6], (H, H), jnp.float32),
        "b_attn": s * jax.random.normal(ks[7], (H,), jnp.float32),
        "attn_u": jax.random.normal(ks[8], (H, 1), jnp.float32),
        "w_fc":   s * jax.random.normal(ks[9], (1, 2 * H), jnp.float32),
        "b_fc":   s * jax.random.normal(ks[10], (1,), jnp.float32),
    }


if __name__ == "__main__":
    import numpy as np

    B, T, F, H = 8, 8, 10, 32
    key = jax.random.PRNGKey(0)
    kx, kp = jax.random.split(key)
    x = jax.random.normal(kx, (B, T, F), jnp.float32)
    params = make_params(kp, num_features=F, num_hidden=H)

    # 2 batch blocks of 4 -> grid=(2,) with "parallel" semantics (v7x megacore).
    y, feature = model_forward(x, params, batch_block=4)
    jax.block_until_ready((y, feature))

    y_ref, feat_ref = _reference_forward(x, params)
    np.testing.assert_allclose(np.asarray(y), np.asarray(y_ref),
                               rtol=1e-3, atol=1e-5)
    np.testing.assert_allclose(np.asarray(feature), np.asarray(feat_ref),
                               rtol=1e-3, atol=1e-5)

    print("KERNEL_OK")
</pallas_src>

<mosaic_0001>
module attributes {stable_mosaic.version = 11 : i64} {
  func.func @_model_kernel(%arg0: i32, %arg1: memref<1x32x10xf32, #tpu.memory_space<vmem>>, %arg2: memref<10x10xf32, #tpu.memory_space<vmem>>, %arg3: memref<1x10xf32, #tpu.memory_space<vmem>>, %arg4: memref<10x128xf32, #tpu.memory_space<vmem>>, %arg5: memref<32x128xf32, #tpu.memory_space<vmem>>, %arg6: memref<1x128xf32, #tpu.memory_space<vmem>>, %arg7: memref<32x32xf32, #tpu.memory_space<vmem>>, %arg8: memref<1x32xf32, #tpu.memory_space<vmem>>, %arg9: memref<1x32xf32, #tpu.memory_space<vmem>>, %arg10: memref<1x32xf32, #tpu.memory_space<vmem>>, %arg11: memref<1x32xf32, #tpu.memory_space<vmem>>, %arg12: memref<1x1xf32, #tpu.memory_space<vmem>>, %arg13: memref<1x4x1xf32, #tpu.memory_space<vmem>>, %arg14: memref<1x4x64xf32, #tpu.memory_space<vmem>>, %arg15: memref<32x32xf32, #tpu.memory_space<vmem>>) attributes {dimension_semantics = [#tpu.dimension_semantics<parallel>], iteration_bounds = array<i64: 2>, scalar_prefetch = 0 : i64, scratch_operands = 1 : i64, tpu.core_type = #tpu.core_type<tc>, window_params = [{transform_indices = @transform_0, window_bounds = array<i64: 1, 32, 10>}, {pipeline_mode = #tpu.pipeline_mode<synchronous>, transform_indices = @transform_1, window_bounds = array<i64: 10, 10>}, {pipeline_mode = #tpu.pipeline_mode<synchronous>, transform_indices = @transform_2, window_bounds = array<i64: 1, 10>}, {pipeline_mode = #tpu.pipeline_mode<synchronous>, transform_indices = @transform_3, window_bounds = array<i64: 10, 128>}, {pipeline_mode = #tpu.pipeline_mode<synchronous>, transform_indices = @transform_4, window_bounds = array<i64: 32, 128>}, {pipeline_mode = #tpu.pipeline_mode<synchronous>, transform_indices = @transform_5, window_bounds = array<i64: 1, 128>}, {pipeline_mode = #tpu.pipeline_mode<synchronous>, transform_indices = @transform_6, window_bounds = array<i64: 32, 32>}, {pipeline_mode = #tpu.pipeline_mode<synchronous>, transform_indices = @transform_7, window_bounds = array<i64: 1, 32>}, {pipeline_mode = #tpu.pipeline_mode<synchronous>, transform_indices = @transform_8, window_bounds = array<i64: 1, 32>}, {pipeline_mode = #tpu.pipeline_mode<synchronous>, transform_indices = @transform_9, window_bounds = array<i64: 1, 32>}, {pipeline_mode = #tpu.pipeline_mode<synchronous>, transform_indices = @transform_10, window_bounds = array<i64: 1, 32>}, {pipeline_mode = #tpu.pipeline_mode<synchronous>, transform_indices = @transform_11, window_bounds = array<i64: 1, 1>}, {transform_indices = @transform_12, window_bounds = array<i64: 1, 4, 1>}, {transform_indices = @transform_13, window_bounds = array<i64: 1, 4, 64>}]} {
    %c0 = arith.constant 0 : index
    %c0_0 = arith.constant 0 : index
    %c0_1 = arith.constant 0 : index
    %0 = vector.load %arg1[%c0, %c0_0, %c0_1] : memref<1x32x10xf32, #tpu.memory_space<vmem>>, vector<1x32x10xf32>
    %1 = vector.shape_cast %0 : vector<1x32x10xf32> to vector<32x10xf32>
    %c0_2 = arith.constant 0 : index
    %c0_3 = arith.constant 0 : index
    %2 = vector.load %arg2[%c0_2, %c0_3] : memref<10x10xf32, #tpu.memory_space<vmem>>, vector<10x10xf32>
    %cst = arith.constant dense<0.000000e+00> : vector<32x10xf32>
    %3 = tpu.matmul %1, %2, %cst {dimension_numbers = #tpu.dot_dimension_numbers<[1], [0], [0], [1], [0, 0, 1, 1], [], []>} : vector<32x10xf32>, vector<10x10xf32>, vector<32x10xf32> -> vector<32x10xf32>
    %c0_4 = arith.constant 0 : index
    %c0_5 = arith.constant 0 : index
    %4 = vector.load %arg3[%c0_4, %c0_5] : memref<1x10xf32, #tpu.memory_space<vmem>>, vector<1x10xf32>
    %5 = vector.broadcast %4 : vector<1x10xf32> to vector<32x10xf32>
    %6 = arith.addf %3, %5 : vector<32x10xf32>
    %7 = math.tanh %6 : vector<32x10xf32>
    %c0_6 = arith.constant 0 : index
    %c0_7 = arith.constant 0 : index
    %8 = vector.load %arg4[%c0_6, %c0_7] : memref<10x128xf32, #tpu.memory_space<vmem>>, vector<10x128xf32>
    %cst_8 = arith.constant dense<0.000000e+00> : vector<32x128xf32>
    %9 = tpu.matmul %7, %8, %cst_8 {dimension_numbers = #tpu.dot_dimension_numbers<[1], [0], [0], [1], [0, 0, 1, 1], [], []>} : vector<32x10xf32>, vector<10x128xf32>, vector<32x128xf32> -> vector<32x128xf32>
    %c0_9 = arith.constant 0 : index
    %c0_10 = arith.constant 0 : index
    %10 = vector.load %arg6[%c0_9, %c0_10] : memref<1x128xf32, #tpu.memory_space<vmem>>, vector<1x128xf32>
    %11 = vector.broadcast %10 : vector<1x128xf32> to vector<32x128xf32>
    %12 = arith.addf %9, %11 : vector<32x128xf32>
    %c0_11 = arith.constant 0 : index
    %c0_12 = arith.constant 0 : index
    %13 = vector.load %arg5[%c0_11, %c0_12] : memref<32x128xf32, #tpu.memory_space<vmem>>, vector<32x128xf32>
    %cst_13 = arith.constant 0.000000e+00 : f32
    %14 = vector.broadcast %cst_13 : f32 to vector<4x32xf32>
    %cst_14 = arith.constant 0.000000e+00 : f32
    %15 = vector.broadcast %cst_14 : f32 to vector<4x32xf32>
    %16 = vector.extract_strided_slice %12 {offsets = [0, 0], sizes = [4, 128], strides = [1, 1]} : vector<32x128xf32> to vector<4x128xf32>
    %cst_15 = arith.constant dense<0.000000e+00> : vector<4x128xf32>
    %17 = tpu.matmul %14, %13, %cst_15 {dimension_numbers = #tpu.dot_dimension_numbers<[1], [0], [0], [1], [0, 0, 1, 1], [], []>} : vector<4x32xf32>, vector<32x128xf32>, vector<4x128xf32> -> vector<4x128xf32>
    %18 = arith.addf %16, %17 : vector<4x128xf32>
    %19 = vector.extract_strided_slice %18 {offsets = [0, 0], sizes = [4, 96], strides = [1, 1]} : vector<4x128xf32> to vector<4x96xf32>
    %20 = arith.negf %19 : vector<4x96xf32>
    %21 = math.exp %20 : vector<4x96xf32>
    %cst_16 = arith.constant 1.000000e+00 : f32
    %22 = vector.broadcast %cst_16 : f32 to vector<4x96xf32>
    %23 = arith.addf %22, %21 : vector<4x96xf32>
    %24 = arith.divf %22, %23 : vector<4x96xf32>
    %25 = vector.extract_strided_slice %18 {offsets = [0, 96], sizes = [4, 32], strides = [1, 1]} : vector<4x128xf32> to vector<4x32xf32>
    %26 = math.tanh %25 : vector<4x32xf32>
    %27 = vector.extract_strided_slice %24 {offsets = [0, 0], sizes = [4, 32], strides = [1, 1]} : vector<4x96xf32> to vector<4x32xf32>
    %28 = vector.extract_strided_slice %24 {offsets = [0, 32], sizes = [4, 32], strides = [1, 1]} : vector<4x96xf32> to vector<4x32xf32>
    %29 = vector.extract_strided_slice %24 {offsets = [0, 64], sizes = [4, 32], strides = [1, 1]} : vector<4x96xf32> to vector<4x32xf32>
    %30 = arith.mulf %28, %15 : vector<4x32xf32>
    %31 = arith.mulf %27, %26 : vector<4x32xf32>
    %32 = arith.addf %30, %31 : vector<4x32xf32>
    %33 = math.tanh %32 : vector<4x32xf32>
    %34 = arith.mulf %29, %33 : vector<4x32xf32>
    %c0_17 = arith.constant 0 : index
    %c0_18 = arith.constant 0 : index
    %35 = vector.load %arg15[%c0_17, %c0_18] : memref<32x32xf32, #tpu.memory_space<vmem>>, vector<4x32xf32>
    tpu.vector_store %arg15[%c0_17, %c0_18], %34 {strides = array<i32>} : memref<32x32xf32, #tpu.memory_space<vmem>>, vector<4x32xf32>,
    %36 = vector.extract_strided_slice %12 {offsets = [4, 0], sizes = [4, 128], strides = [1, 1]} : vector<32x128xf32> to vector<4x128xf32>
    %cst_19 = arith.constant dense<0.000000e+00> : vector<4x128xf32>
    %37 = tpu.matmul %34, %13, %cst_19 {dimension_numbers = #tpu.dot_dimension_numbers<[1], [0], [0], [1], [0, 0, 1, 1], [], []>} : vector<4x32xf32>, vector<32x128xf32>, vector<4x128xf32> -> vector<4x128xf32>
    %38 = arith.addf %36, %37 : vector<4x128xf32>
    %39 = vector.extract_strided_slice %38 {offsets = [0, 0], sizes = [4, 96], strides = [1, 1]} : vector<4x128xf32> to vector<4x96xf32>
    %40 = arith.negf %39 : vector<4x96xf32>
    %41 = math.exp %40 : vector<4x96xf32>
    %cst_20 = arith.constant 1.000000e+00 : f32
    %42 = vector.broadcast %cst_20 : f32 to vector<4x96xf32>
    %43 = arith.addf %42, %41 : vector<4x96xf32>
    %44 = arith.divf %42, %43 : vector<4x96xf32>
    %45 = vector.extract_strided_slice %38 {offsets = [0, 96], sizes = [4, 32], strides = [1, 1]} : vector<4x128xf32> to vector<4x32xf32>
    %46 = math.tanh %45 : vector<4x32xf32>
    %47 = vector.extract_strided_slice %44 {offsets = [0, 0], sizes = [4, 32], strides = [1, 1]} : vector<4x96xf32> to vector<4x32xf32>
    %48 = vector.extract_strided_slice %44 {offsets = [0, 32], sizes = [4, 32], strides = [1, 1]} : vector<4x96xf32> to vector<4x32xf32>
    %49 = vector.extract_strided_slice %44 {offsets = [0, 64], sizes = [4, 32], strides = [1, 1]} : vector<4x96xf32> to vector<4x32xf32>
    %50 = arith.mulf %48, %32 : vector<4x32xf32>
    %51 = arith.mulf %47, %46 : vector<4x32xf32>
    %52 = arith.addf %50, %51 : vector<4x32xf32>
    %53 = math.tanh %52 : vector<4x32xf32>
    %54 = arith.mulf %49, %53 : vector<4x32xf32>
    %c4 = arith.constant 4 : index
    %c0_21 = arith.constant 0 : index
    %55 = vector.load %arg15[%c4, %c0_21] : memref<32x32xf32, #tpu.memory_space<vmem>>, vector<4x32xf32>
    tpu.vector_store %arg15[%c4, %c0_21], %54 {strides = array<i32>} : memref<32x32xf32, #tpu.memory_space<vmem>>, vector<4x32xf32>,
    %56 = vector.extract_strided_slice %12 {offsets = [8, 0], sizes = [4, 128], strides = [1, 1]} : vector<32x128xf32> to vector<4x128xf32>
    %cst_22 = arith.constant dense<0.000000e+00> : vector<4x128xf32>
    %57 = tpu.matmul %54, %13, %cst_22 {dimension_numbers = #tpu.dot_dimension_numbers<[1], [0], [0], [1], [0, 0, 1, 1], [], []>} : vector<4x32xf32>, vector<32x128xf32>, vector<4x128xf32> -> vector<4x128xf32>
    %58 = arith.addf %56, %57 : vector<4x128xf32>
    %59 = vector.extract_strided_slice %58 {offsets = [0, 0], sizes = [4, 96], strides = [1, 1]} : vector<4x128xf32> to vector<4x96xf32>
    %60 = arith.negf %59 : vector<4x96xf32>
    %61 = math.exp %60 : vector<4x96xf32>
    %cst_23 = arith.constant 1.000000e+00 : f32
    %62 = vector.broadcast %cst_23 : f32 to vector<4x96xf32>
    %63 = arith.addf %62, %61 : vector<4x96xf32>
    %64 = arith.divf %62, %63 : vector<4x96xf32>
    %65 = vector.extract_strided_slice %58 {offsets = [0, 96], sizes = [4, 32], strides = [1, 1]} : vector<4x128xf32> to vector<4x32xf32>
    %66 = math.tanh %65 : vector<4x32xf32>
    %67 = vector.extract_strided_slice %64 {offsets = [0, 0], sizes = [4, 32], strides = [1, 1]} : vector<4x96xf32> to vector<4x32xf32>
    %68 = vector.extract_strided_slice %64 {offsets = [0, 32], sizes = [4, 32], strides = [1, 1]} : vector<4x96xf32> to vector<4x32xf32>
    %69 = vector.extract_strided_slice %64 {offsets = [0, 64], sizes = [4, 32], strides = [1, 1]} : vector<4x96xf32> to vector<4x32xf32>
    %70 = arith.mulf %68, %52 : vector<4x32xf32>
    %71 = arith.mulf %67, %66 : vector<4x32xf32>
    %72 = arith.addf %70, %71 : vector<4x32xf32>
    %73 = math.tanh %72 : vector<4x32xf32>
    %74 = arith.mulf %69, %73 : vector<4x32xf32>
    %c8 = arith.constant 8 : index
    %c0_24 = arith.constant 0 : index
    %75 = vector.load %arg15[%c8, %c0_24] : memref<32x32xf32, #tpu.memory_space<vmem>>, vector<4x32xf32>
    tpu.vector_store %arg15[%c8, %c0_24], %74 {strides = array<i32>} : memref<32x32xf32, #tpu.memory_space<vmem>>, vector<4x32xf32>,
    %76 = vector.extract_strided_slice %12 {offsets = [12, 0], sizes = [4, 128], strides = [1, 1]} : vector<32x128xf32> to vector<4x128xf32>
    %cst_25 = arith.constant dense<0.000000e+00> : vector<4x128xf32>
    %77 = tpu.matmul %74, %13, %cst_25 {dimension_numbers = #tpu.dot_dimension_numbers<[1], [0], [0], [1], [0, 0, 1, 1], [], []>} : vector<4x32xf32>, vector<32x128xf32>, vector<4x128xf32> -> vector<4x128xf32>
    %78 = arith.addf %76, %77 : vector<4x128xf32>
    %79 = vector.extract_strided_slice %78 {offsets = [0, 0], sizes = [4, 96], strides = [1, 1]} : vector<4x128xf32> to vector<4x96xf32>
    %80 = arith.negf %79 : vector<4x96xf32>
    %81 = math.exp %80 : vector<4x96xf32>
    %cst_26 = arith.constant 1.000000e+00 : f32
    %82 = vector.broadcast %cst_26 : f32 to vector<4x96xf32>
    %83 = arith.addf %82, %81 : vector<4x96xf32>
    %84 = arith.divf %82, %83 : vector<4x96xf32>
    %85 = vector.extract_strided_slice %78 {offsets = [0, 96], sizes = [4, 32], strides = [1, 1]} : vector<4x128xf32> to vector<4x32xf32>
    %86 = math.tanh %85 : vector<4x32xf32>
    %87 = vector.extract_strided_slice %84 {offsets = [0, 0], sizes = [4, 32], strides = [1, 1]} : vector<4x96xf32> to vector<4x32xf32>
    %88 = vector.extract_strided_slice %84 {offsets = [0, 32], sizes = [4, 32], strides = [1, 1]} : vector<4x96xf32> to vector<4x32xf32>
    %89 = vector.extract_strided_slice %84 {offsets = [0, 64], sizes = [4, 32], strides = [1, 1]} : vector<4x96xf32> to vector<4x32xf32>
    %90 = arith.mulf %88, %72 : vector<4x32xf32>
    %91 = arith.mulf %87, %86 : vector<4x32xf32>
    %92 = arith.addf %90, %91 : vector<4x32xf32>
    %93 = math.tanh %92 : vector<4x32xf32>
    %94 = arith.mulf %89, %93 : vector<4x32xf32>
    %c12 = arith.constant 12 : index
    %c0_27 = arith.constant 0 : index
    %95 = vector.load %arg15[%c12, %c0_27] : memref<32x32xf32, #tpu.memory_space<vmem>>, vector<4x32xf32>
    tpu.vector_store %arg15[%c12, %c0_27], %94 {strides = array<i32>} : memref<32x32xf32, #tpu.memory_space<vmem>>, vector<4x32xf32>,
    %96 = vector.extract_strided_slice %12 {offsets = [16, 0], sizes = [4, 128], strides = [1, 1]} : vector<32x128xf32> to vector<4x128xf32>
    %cst_28 = arith.constant dense<0.000000e+00> : vector<4x128xf32>
    %97 = tpu.matmul %94, %13, %cst_28 {dimension_numbers = #tpu.dot_dimension_numbers<[1], [0], [0], [1], [0, 0, 1, 1], [], []>} : vector<4x32xf32>, vector<32x128xf32>, vector<4x128xf32> -> vector<4x128xf32>
    %98 = arith.addf %96, %97 : vector<4x128xf32>
    %99 = vector.extract_strided_slice %98 {offsets = [0, 0], sizes = [4, 96], strides = [1, 1]} : vector<4x128xf32> to vector<4x96xf32>
    %100 = arith.negf %99 : vector<4x96xf32>
    %101 = math.exp %100 : vector<4x96xf32>
    %cst_29 = arith.constant 1.000000e+00 : f32
    %102 = vector.broadcast %cst_29 : f32 to vector<4x96xf32>
    %103 = arith.addf %102, %101 : vector<4x96xf32>
    %104 = arith.divf %102, %103 : vector<4x96xf32>
    %105 = vector.extract_strided_slice %98 {offsets = [0, 96], sizes = [4, 32], strides = [1, 1]} : vector<4x128xf32> to vector<4x32xf32>
    %106 = math.tanh %105 : vector<4x32xf32>
    %107 = vector.extract_strided_slice %104 {offsets = [0, 0], sizes = [4, 32], strides = [1, 1]} : vector<4x96xf32> to vector<4x32xf32>
    %108 = vector.extract_strided_slice %104 {offsets = [0, 32], sizes = [4, 32], strides = [1, 1]} : vector<4x96xf32> to vector<4x32xf32>
    %109 = vector.extract_strided_slice %104 {offsets = [0, 64], sizes = [4, 32], strides = [1, 1]} : vector<4x96xf32> to vector<4x32xf32>
    %110 = arith.mulf %108, %92 : vector<4x32xf32>
    %111 = arith.mulf %107, %106 : vector<4x32xf32>
    %112 = arith.addf %110, %111 : vector<4x32xf32>
    %113 = math.tanh %112 : vector<4x32xf32>
    %114 = arith.mulf %109, %113 : vector<4x32xf32>
    %c16 = arith.constant 16 : index
    %c0_30 = arith.constant 0 : index
    %115 = vector.load %arg15[%c16, %c0_30] : memref<32x32xf32, #tpu.memory_space<vmem>>, vector<4x32xf32>
    tpu.vector_store %arg15[%c16, %c0_30], %114 {strides = array<i32>} : memref<32x32xf32, #tpu.memory_space<vmem>>, vector<4x32xf32>,
    %116 = vector.extract_strided_slice %12 {offsets = [20, 0], sizes = [4, 128], strides = [1, 1]} : vector<32x128xf32> to vector<4x128xf32>
    %cst_31 = arith.constant dense<0.000000e+00> : vector<4x128xf32>
    %117 = tpu.matmul %114, %13, %cst_31 {dimension_numbers = #tpu.dot_dimension_numbers<[1], [0], [0], [1], [0, 0, 1, 1], [], []>} : vector<4x32xf32>, vector<32x128xf32>, vector<4x128xf32> -> vector<4x128xf32>
    %118 = arith.addf %116, %117 : vector<4x128xf32>
    %119 = vector.extract_strided_slice %118 {offsets = [0, 0], sizes = [4, 96], strides = [1, 1]} : vector<4x128xf32> to vector<4x96xf32>
    %120 = arith.negf %119 : vector<4x96xf32>
    %121 = math.exp %120 : vector<4x96xf32>
    %cst_32 = arith.constant 1.000000e+00 : f32
    %122 = vector.broadcast %cst_32 : f32 to vector<4x96xf32>
    %123 = arith.addf %122, %121 : vector<4x96xf32>
    %124 = arith.divf %122, %123 : vector<4x96xf32>
    %125 = vector.extract_strided_slice %118 {offsets = [0, 96], sizes = [4, 32], strides = [1, 1]} : vector<4x128xf32> to vector<4x32xf32>
    %126 = math.tanh %125 : vector<4x32xf32>
    %127 = vector.extract_strided_slice %124 {offsets = [0, 0], sizes = [4, 32], strides = [1, 1]} : vector<4x96xf32> to vector<4x32xf32>
    %128 = vector.extract_strided_slice %124 {offsets = [0, 32], sizes = [4, 32], strides = [1, 1]} : vector<4x96xf32> to vector<4x32xf32>
    %129 = vector.extract_strided_slice %124 {offsets = [0, 64], sizes = [4, 32], strides = [1, 1]} : vector<4x96xf32> to vector<4x32xf32>
    %130 = arith.mulf %128, %112 : vector<4x32xf32>
    %131 = arith.mulf %127, %126 : vector<4x32xf32>
    %132 = arith.addf %130, %131 : vector<4x32xf32>
    %133 = math.tanh %132 : vector<4x32xf32>
    %134 = arith.mulf %129, %133 : vector<4x32xf32>
    %c20 = arith.constant 20 : index
    %c0_33 = arith.constant 0 : index
    %135 = vector.load %arg15[%c20, %c0_33] : memref<32x32xf32, #tpu.memory_space<vmem>>, vector<4x32xf32>
    tpu.vector_store %arg15[%c20, %c0_33], %134 {strides = array<i32>} : memref<32x32xf32, #tpu.memory_space<vmem>>, vector<4x32xf32>,
    %136 = vector.extract_strided_slice %12 {offsets = [24, 0], sizes = [4, 128], strides = [1, 1]} : vector<32x128xf32> to vector<4x128xf32>
    %cst_34 = arith.constant dense<0.000000e+00> : vector<4x128xf32>
    %137 = tpu.matmul %134, %13, %cst_34 {dimension_numbers = #tpu.dot_dimension_numbers<[1], [0], [0], [1], [0, 0, 1, 1], [], []>} : vector<4x32xf32>, vector<32x128xf32>, vector<4x128xf32> -> vector<4x128xf32>
    %138 = arith.addf %136, %137 : vector<4x128xf32>
    %139 = vector.extract_strided_slice %138 {offsets = [0, 0], sizes = [4, 96], strides = [1, 1]} : vector<4x128xf32> to vector<4x96xf32>
    %140 = arith.negf %139 : vector<4x96xf32>
    %141 = math.exp %140 : vector<4x96xf32>
    %cst_35 = arith.constant 1.000000e+00 : f32
    %142 = vector.broadcast %cst_35 : f32 to vector<4x96xf32>
    %143 = arith.addf %142, %141 : vector<4x96xf32>
    %144 = arith.divf %142, %143 : vector<4x96xf32>
    %145 = vector.extract_strided_slice %138 {offsets = [0, 96], sizes = [4, 32], strides = [1, 1]} : vector<4x128xf32> to vector<4x32xf32>
    %146 = math.tanh %145 : vector<4x32xf32>
    %147 = vector.extract_strided_slice %144 {offsets = [0, 0], sizes = [4, 32], strides = [1, 1]} : vector<4x96xf32> to vector<4x32xf32>
    %148 = vector.extract_strided_slice %144 {offsets = [0, 32], sizes = [4, 32], strides = [1, 1]} : vector<4x96xf32> to vector<4x32xf32>
    %149 = vector.extract_strided_slice %144 {offsets = [0, 64], sizes = [4, 32], strides = [1, 1]} : vector<4x96xf32> to vector<4x32xf32>
    %150 = arith.mulf %148, %132 : vector<4x32xf32>
    %151 = arith.mulf %147, %146 : vector<4x32xf32>
    %152 = arith.addf %150, %151 : vector<4x32xf32>
    %153 = math.tanh %152 : vector<4x32xf32>
    %154 = arith.mulf %149, %153 : vector<4x32xf32>
    %c24 = arith.constant 24 : index
    %c0_36 = arith.constant 0 : index
    %155 = vector.load %arg15[%c24, %c0_36] : memref<32x32xf32, #tpu.memory_space<vmem>>, vector<4x32xf32>
    tpu.vector_store %arg15[%c24, %c0_36], %154 {strides = array<i32>} : memref<32x32xf32, #tpu.memory_space<vmem>>, vector<4x32xf32>,
    %156 = vector.extract_strided_slice %12 {offsets = [28, 0], sizes = [4, 128], strides = [1, 1]} : vector<32x128xf32> to vector<4x128xf32>
    %cst_37 = arith.constant dense<0.000000e+00> : vector<4x128xf32>
    %157 = tpu.matmul %154, %13, %cst_37 {dimension_numbers = #tpu.dot_dimension_numbers<[1], [0], [0], [1], [0, 0, 1, 1], [], []>} : vector<4x32xf32>, vector<32x128xf32>, vector<4x128xf32> -> vector<4x128xf32>
    %158 = arith.addf %156, %157 : vector<4x128xf32>
    %159 = vector.extract_strided_slice %158 {offsets = [0, 0], sizes = [4, 96], strides = [1, 1]} : vector<4x128xf32> to vector<4x96xf32>
    %160 = arith.negf %159 : vector<4x96xf32>
    %161 = math.exp %160 : vector<4x96xf32>
    %cst_38 = arith.constant 1.000000e+00 : f32
    %162 = vector.broadcast %cst_38 : f32 to vector<4x96xf32>
    %163 = arith.addf %162, %161 : vector<4x96xf32>
    %164 = arith.divf %162, %163 : vector<4x96xf32>
    %165 = vector.extract_strided_slice %158 {offsets = [0, 96], sizes = [4, 32], strides = [1, 1]} : vector<4x128xf32> to vector<4x32xf32>
    %166 = math.tanh %165 : vector<4x32xf32>
    %167 = vector.extract_strided_slice %164 {offsets = [0, 0], sizes = [4, 32], strides = [1, 1]} : vector<4x96xf32> to vector<4x32xf32>
    %168 = vector.extract_strided_slice %164 {offsets = [0, 32], sizes = [4, 32], strides = [1, 1]} : vector<4x96xf32> to vector<4x32xf32>
    %169 = vector.extract_strided_slice %164 {offsets = [0, 64], sizes = [4, 32], strides = [1, 1]} : vector<4x96xf32> to vector<4x32xf32>
    %170 = arith.mulf %168, %152 : vector<4x32xf32>
    %171 = arith.mulf %167, %166 : vector<4x32xf32>
    %172 = arith.addf %170, %171 : vector<4x32xf32>
    %173 = math.tanh %172 : vector<4x32xf32>
    %174 = arith.mulf %169, %173 : vector<4x32xf32>
    %c28 = arith.constant 28 : index
    %c0_39 = arith.constant 0 : index
    %175 = vector.load %arg15[%c28, %c0_39] : memref<32x32xf32, #tpu.memory_space<vmem>>, vector<4x32xf32>
    tpu.vector_store %arg15[%c28, %c0_39], %174 {strides = array<i32>} : memref<32x32xf32, #tpu.memory_space<vmem>>, vector<4x32xf32>,
    %c0_40 = arith.constant 0 : index
    %c0_41 = arith.constant 0 : index
    %176 = vector.load %arg15[%c0_40, %c0_41] : memref<32x32xf32, #tpu.memory_space<vmem>>, vector<32x32xf32>
    %c0_42 = arith.constant 0 : index
    %c0_43 = arith.constant 0 : index
    %177 = vector.load %arg7[%c0_42, %c0_43] : memref<32x32xf32, #tpu.memory_space<vmem>>, vector<32x32xf32>
    %cst_44 = arith.constant dense<0.000000e+00> : vector<32x32xf32>
    %178 = tpu.matmul %176, %177, %cst_44 {dimension_numbers = #tpu.dot_dimension_numbers<[1], [0], [0], [1], [0, 0, 1, 1], [], []>} : vector<32x32xf32>, vector<32x32xf32>, vector<32x32xf32> -> vector<32x32xf32>
    %c0_45 = arith.constant 0 : index
    %c0_46 = arith.constant 0 : index
    %179 = vector.load %arg8[%c0_45, %c0_46] : memref<1x32xf32, #tpu.memory_space<vmem>>, vector<1x32xf32>
    %180 = vector.broadcast %179 : vector<1x32xf32> to vector<32x32xf32>
    %181 = arith.addf %178, %180 : vector<32x32xf32>
    %182 = math.tanh %181 : vector<32x32xf32>
    %c0_47 = arith.constant 0 : index
    %c0_48 = arith.constant 0 : index
    %183 = vector.load %arg9[%c0_47, %c0_48] : memref<1x32xf32, #tpu.memory_space<vmem>>, vector<1x32xf32>
    %184 = vector.broadcast %183 : vector<1x32xf32> to vector<32x32xf32>
    %185 = arith.mulf %182, %184 : vector<32x32xf32>
    %cst_49 = arith.constant dense<0.000000e+00> : vector<32xf32>
    %186 = vector.multi_reduction <add>, %185, %cst_49 [1] : vector<32x32xf32> to vector<32xf32>
    %187 = vector.shape_cast %186 : vector<32xf32> to vector<32x1xf32>
    %188 = vector.extract_strided_slice %187 {offsets = [0, 0], sizes = [4, 1], strides = [1, 1]} : vector<32x1xf32> to vector<4x1xf32>
    %189 = vector.extract_strided_slice %187 {offsets = [4, 0], sizes = [4, 1], strides = [1, 1]} : vector<32x1xf32> to vector<4x1xf32>
    %190 = vector.extract_strided_slice %187 {offsets = [8, 0], sizes = [4, 1], strides = [1, 1]} : vector<32x1xf32> to vector<4x1xf32>
    %191 = vector.extract_strided_slice %187 {offsets = [12, 0], sizes = [4, 1], strides = [1, 1]} : vector<32x1xf32> to vector<4x1xf32>
    %192 = vector.extract_strided_slice %187 {offsets = [16, 0], sizes = [4, 1], strides = [1, 1]} : vector<32x1xf32> to vector<4x1xf32>
    %193 = vector.extract_strided_slice %187 {offsets = [20, 0], sizes = [4, 1], strides = [1, 1]} : vector<32x1xf32> to vector<4x1xf32>
    %194 = vector.extract_strided_slice %187 {offsets = [24, 0], sizes = [4, 1], strides = [1, 1]} : vector<32x1xf32> to vector<4x1xf32>
    %195 = vector.extract_strided_slice %187 {offsets = [28, 0], sizes = [4, 1], strides = [1, 1]} : vector<32x1xf32> to vector<4x1xf32>
    %196 = arith.maximumf %188, %189 : vector<4x1xf32>
    %197 = arith.maximumf %196, %190 : vector<4x1xf32>
    %198 = arith.maximumf %197, %191 : vector<4x1xf32>
    %199 = arith.maximumf %198, %192 : vector<4x1xf32>
    %200 = arith.maximumf %199, %193 : vector<4x1xf32>
    %201 = arith.maximumf %200, %194 : vector<4x1xf32>
    %202 = arith.maximumf %201, %195 : vector<4x1xf32>
    %203 = arith.subf %188, %202 : vector<4x1xf32>
    %204 = math.exp %203 : vector<4x1xf32>
    %205 = arith.subf %189, %202 : vector<4x1xf32>
    %206 = math.exp %205 : vector<4x1xf32>
    %207 = arith.subf %190, %202 : vector<4x1xf32>
    %208 = math.exp %207 : vector<4x1xf32>
    %209 = arith.subf %191, %202 : vector<4x1xf32>
    %210 = math.exp %209 : vector<4x1xf32>
    %211 = arith.subf %192, %202 : vector<4x1xf32>
    %212 = math.exp %211 : vector<4x1xf32>
    %213 = arith.subf %193, %202 : vector<4x1xf32>
    %214 = math.exp %213 : vector<4x1xf32>
    %215 = arith.subf %194, %202 : vector<4x1xf32>
    %216 = math.exp %215 : vector<4x1xf32>
    %217 = arith.subf %195, %202 : vector<4x1xf32>
    %218 = math.exp %217 : vector<4x1xf32>
    %219 = arith.addf %204, %206 : vector<4x1xf32>
    %220 = arith.addf %219, %208 : vector<4x1xf32>
    %221 = arith.addf %220, %210 : vector<4x1xf32>
    %222 = arith.addf %221, %212 : vector<4x1xf32>
    %223 = arith.addf %222, %214 : vector<4x1xf32>
    %224 = arith.addf %223, %216 : vector<4x1xf32>
    %225 = arith.addf %224, %218 : vector<4x1xf32>
    %cst_50 = arith.constant 1.000000e+00 : f32
    %226 = vector.broadcast %cst_50 : f32 to vector<4x1xf32>
    %227 = arith.divf %226, %225 : vector<4x1xf32>
    %cst_51 = arith.constant 0.000000e+00 : f32
    %228 = vector.broadcast %cst_51 : f32 to vector<4x32xf32>
    %229 = arith.mulf %204, %227 : vector<4x1xf32>
    %230 = vector.extract_strided_slice %176 {offsets = [0, 0], sizes = [4, 32], strides = [1, 1]} : vector<32x32xf32> to vector<4x32xf32>
    %231 = vector.broadcast %229 : vector<4x1xf32> to vector<4x32xf32>
    %232 = arith.mulf %231, %230 : vector<4x32xf32>
    %233 = arith.addf %228, %232 : vector<4x32xf32>
    %234 = arith.mulf %206, %227 : vector<4x1xf32>
    %235 = vector.extract_strided_slice %176 {offsets = [4, 0], sizes = [4, 32], strides = [1, 1]} : vector<32x32xf32> to vector<4x32xf32>
    %236 = vector.broadcast %234 : vector<4x1xf32> to vector<4x32xf32>
    %237 = arith.mulf %236, %235 : vector<4x32xf32>
    %238 = arith.addf %233, %237 : vector<4x32xf32>
    %239 = arith.mulf %208, %227 : vector<4x1xf32>
    %240 = vector.extract_strided_slice %176 {offsets = [8, 0], sizes = [4, 32], strides = [1, 1]} : vector<32x32xf32> to vector<4x32xf32>
    %241 = vector.broadcast %239 : vector<4x1xf32> to vector<4x32xf32>
    %242 = arith.mulf %241, %240 : vector<4x32xf32>
    %243 = arith.addf %238, %242 : vector<4x32xf32>
    %244 = arith.mulf %210, %227 : vector<4x1xf32>
    %245 = vector.extract_strided_slice %176 {offsets = [12, 0], sizes = [4, 32], strides = [1, 1]} : vector<32x32xf32> to vector<4x32xf32>
    %246 = vector.broadcast %244 : vector<4x1xf32> to vector<4x32xf32>
    %247 = arith.mulf %246, %245 : vector<4x32xf32>
    %248 = arith.addf %243, %247 : vector<4x32xf32>
    %249 = arith.mulf %212, %227 : vector<4x1xf32>
    %250 = vector.extract_strided_slice %176 {offsets = [16, 0], sizes = [4, 32], strides = [1, 1]} : vector<32x32xf32> to vector<4x32xf32>
    %251 = vector.broadcast %249 : vector<4x1xf32> to vector<4x32xf32>
    %252 = arith.mulf %251, %250 : vector<4x32xf32>
    %253 = arith.addf %248, %252 : vector<4x32xf32>
    %254 = arith.mulf %214, %227 : vector<4x1xf32>
    %255 = vector.extract_strided_slice %176 {offsets = [20, 0], sizes = [4, 32], strides = [1, 1]} : vector<32x32xf32> to vector<4x32xf32>
    %256 = vector.broadcast %254 : vector<4x1xf32> to vector<4x32xf32>
    %257 = arith.mulf %256, %255 : vector<4x32xf32>
    %258 = arith.addf %253, %257 : vector<4x32xf32>
    %259 = arith.mulf %216, %227 : vector<4x1xf32>
    %260 = vector.extract_strided_slice %176 {offsets = [24, 0], sizes = [4, 32], strides = [1, 1]} : vector<32x32xf32> to vector<4x32xf32>
    %261 = vector.broadcast %259 : vector<4x1xf32> to vector<4x32xf32>
    %262 = arith.mulf %261, %260 : vector<4x32xf32>
    %263 = arith.addf %258, %262 : vector<4x32xf32>
    %264 = arith.mulf %218, %227 : vector<4x1xf32>
    %265 = vector.extract_strided_slice %176 {offsets = [28, 0], sizes = [4, 32], strides = [1, 1]} : vector<32x32xf32> to vector<4x32xf32>
    %266 = vector.broadcast %264 : vector<4x1xf32> to vector<4x32xf32>
    %267 = arith.mulf %266, %265 : vector<4x32xf32>
    %268 = arith.addf %263, %267 : vector<4x32xf32>
    %c0_52 = arith.constant 0 : index
    %c0_53 = arith.constant 0 : index
    %c0_54 = arith.constant 0 : index
    %269 = vector.load %arg14[%c0_52, %c0_53, %c0_54] : memref<1x4x64xf32, #tpu.memory_space<vmem>>, vector<1x4x32xf32>
    %270 = vector.shape_cast %269 : vector<1x4x32xf32> to vector<4x32xf32>
    %271 = vector.shape_cast %174 : vector<4x32xf32> to vector<1x4x32xf32>
    tpu.vector_store %arg14[%c0_52, %c0_53, %c0_54], %271 {strides = array<i32>} : memref<1x4x64xf32, #tpu.memory_space<vmem>>, vector<1x4x32xf32>,
    %c0_55 = arith.constant 0 : index
    %c0_56 = arith.constant 0 : index
    %c32 = arith.constant 32 : index
    %272 = vector.load %arg14[%c0_55, %c0_56, %c32] : memref<1x4x64xf32, #tpu.memory_space<vmem>>, vector<1x4x32xf32>
    %273 = vector.shape_cast %272 : vector<1x4x32xf32> to vector<4x32xf32>
    %274 = vector.shape_cast %268 : vector<4x32xf32> to vector<1x4x32xf32>
    tpu.vector_store %arg14[%c0_55, %c0_56, %c32], %274 {strides = array<i32>} : memref<1x4x64xf32, #tpu.memory_space<vmem>>, vector<1x4x32xf32>,
    %c0_57 = arith.constant 0 : index
    %c0_58 = arith.constant 0 : index
    %275 = vector.load %arg10[%c0_57, %c0_58] : memref<1x32xf32, #tpu.memory_space<vmem>>, vector<1x32xf32>
    %276 = vector.broadcast %275 : vector<1x32xf32> to vector<4x32xf32>
    %277 = arith.mulf %174, %276 : vector<4x32xf32>
    %c0_59 = arith.constant 0 : index
    %c0_60 = arith.constant 0 : index
    %278 = vector.load %arg11[%c0_59, %c0_60] : memref<1x32xf32, #tpu.memory_space<vmem>>, vector<1x32xf32>
    %279 = vector.broadcast %278 : vector<1x32xf32> to vector<4x32xf32>
    %280 = arith.mulf %268, %279 : vector<4x32xf32>
    %281 = arith.addf %277, %280 : vector<4x32xf32>
    %cst_61 = arith.constant dense<0.000000e+00> : vector<4xf32>
    %282 = vector.multi_reduction <add>, %281, %cst_61 [1] : vector<4x32xf32> to vector<4xf32>
    %283 = vector.shape_cast %282 : vector<4xf32> to vector<4x1xf32>
    %c0_62 = arith.constant 0 : index
    %c0_63 = arith.constant 0 : index
    %284 = vector.load %arg12[%c0_62, %c0_63] : memref<1x1xf32, #tpu.memory_space<vmem>>, vector<1x1xf32>
    %285 = vector.broadcast %284 : vector<1x1xf32> to vector<4x1xf32>
    %286 = arith.addf %283, %285 : vector<4x1xf32>
    %c0_64 = arith.constant 0 : index
    %c0_65 = arith.constant 0 : index
    %c0_66 = arith.constant 0 : index
    %287 = vector.load %arg13[%c0_64, %c0_65, %c0_66] : memref<1x4x1xf32, #tpu.memory_space<vmem>>, vector<1x4x1xf32>
    %288 = vector.shape_cast %287 : vector<1x4x1xf32> to vector<4x1xf32>
    %289 = vector.shape_cast %286 : vector<4x1xf32> to vector<1x4x1xf32>
    tpu.vector_store %arg13[%c0_64, %c0_65, %c0_66], %289 {strides = array<i32>} : memref<1x4x1xf32, #tpu.memory_space<vmem>>, vector<1x4x1xf32>,
    return
  }
  func.func @transform_0(%arg0: i32) -> (i32, i32, i32) {
    %c0_i32 = arith.constant 0 : i32
    %c0_i32_0 = arith.constant 0 : i32
    %c0_i32_1 = arith.constant 0 : i32
    return %arg0, %c0_i32, %c0_i32_0 : i32, i32, i32
  }
  func.func @transform_1(%arg0: i32) -> (i32, i32) {
    %c0_i32 = arith.constant 0 : i32
    %c0_i32_0 = arith.constant 0 : i32
    %c0_i32_1 = arith.constant 0 : i32
    return %c0_i32, %c0_i32_0 : i32, i32
  }
  func.func @transform_2(%arg0: i32) -> (i32, i32) {
    %c0_i32 = arith.constant 0 : i32
    %c0_i32_0 = arith.constant 0 : i32
    %c0_i32_1 = arith.constant 0 : i32
    return %c0_i32, %c0_i32_0 : i32, i32
  }
  func.func @transform_3(%arg0: i32) -> (i32, i32) {
    %c0_i32 = arith.constant 0 : i32
    %c0_i32_0 = arith.constant 0 : i32
    %c0_i32_1 = arith.constant 0 : i32
    return %c0_i32, %c0_i32_0 : i32, i32
  }
  func.func @transform_4(%arg0: i32) -> (i32, i32) {
    %c0_i32 = arith.constant 0 : i32
    %c0_i32_0 = arith.constant 0 : i32
    %c0_i32_1 = arith.constant 0 : i32
    return %c0_i32, %c0_i32_0 : i32, i32
  }
  func.func @transform_5(%arg0: i32) -> (i32, i32) {
    %c0_i32 = arith.constant 0 : i32
    %c0_i32_0 = arith.constant 0 : i32
    %c0_i32_1 = arith.constant 0 : i32
    return %c0_i32, %c0_i32_0 : i32, i32
  }
  func.func @transform_6(%arg0: i32) -> (i32, i32) {
    %c0_i32 = arith.constant 0 : i32
    %c0_i32_0 = arith.constant 0 : i32
    %c0_i32_1 = arith.constant 0 : i32
    return %c0_i32, %c0_i32_0 : i32, i32
  }
  func.func @transform_7(%arg0: i32) -> (i32, i32) {
    %c0_i32 = arith.constant 0 : i32
    %c0_i32_0 = arith.constant 0 : i32
    %c0_i32_1 = arith.constant 0 : i32
    return %c0_i32, %c0_i32_0 : i32, i32
  }
  func.func @transform_8(%arg0: i32) -> (i32, i32) {
    %c0_i32 = arith.constant 0 : i32
    %c0_i32_0 = arith.constant 0 : i32
    %c0_i32_1 = arith.constant 0 : i32
    return %c0_i32, %c0_i32_0 : i32, i32
  }
  func.func @transform_9(%arg0: i32) -> (i32, i32) {
    %c0_i32 = arith.constant 0 : i32
    %c0_i32_0 = arith.constant 0 : i32
    %c0_i32_1 = arith.constant 0 : i32
    return %c0_i32, %c0_i32_0 : i32, i32
  }
  func.func @transform_10(%arg0: i32) -> (i32, i32) {
    %c0_i32 = arith.constant 0 : i32
    %c0_i32_0 = arith.constant 0 : i32
    %c0_i32_1 = arith.constant 0 : i32
    return %c0_i32, %c0_i32_0 : i32, i32
  }
  func.func @transform_11(%arg0: i32) -> (i32, i32) {
    %c0_i32 = arith.constant 0 : i32
    %c0_i32_0 = arith.constant 0 : i32
    %c0_i32_1 = arith.constant 0 : i32
    return %c0_i32, %c0_i32_0 : i32, i32
  }
  func.func @transform_12(%arg0: i32) -> (i32, i32, i32) {
    %c0_i32 = arith.constant 0 : i32
    %c0_i32_0 = arith.constant 0 : i32
    %c0_i32_1 = arith.constant 0 : i32
    return %arg0, %c0_i32, %c0_i32_0 : i32, i32, i32
  }
  func.func @transform_13(%arg0: i32) -> (i32, i32, i32) {
    %c0_i32 = arith.constant 0 : i32
    %c0_i32_0 = arith.constant 0 : i32
    %c0_i32_1 = arith.constant 0 : i32
    return %arg0, %c0_i32, %c0_i32_0 : i32, i32, i32
  }
}

</mosaic_0001>

<bundles_post_ra>
// kernel: tpu_custom_call.1
= control target key start
LH: loop header
LB: loop body
LE: loop exit
PB: predicated region body
PF: predicated region fallthrough
CT: control target
= control target key end

     0   :  { %s2921_s0 = inlined_call_operand.vmem [shape: f32[2,32,10], index: 0, kind: input, shape index: {}]   ;;  %s2922_s1 = inlined_call_operand.vmem [shape: f32[10,10], index: 1, kind: input, shape index: {}]   ;;  %s2923_s2 = inlined_call_operand.vmem [shape: f32[1,10], index: 2, kind: input, shape index: {}]   ;;  %s2924_s3 = inlined_call_operand.vmem [shape: f32[10,128], index: 3, kind: input, shape index: {}]   ;;  %s2925_s4 = inlined_call_operand.vmem [shape: f32[32,128], index: 4, kind: input, shape index: {}]   ;;  %s2926_s5 = inlined_call_operand.vmem [shape: f32[1,128], index: 5, kind: input, shape index: {}]   ;;  %s2927_s6 = inlined_call_operand.vmem [shape: f32[32,32], index: 6, kind: input, shape index: {}]   ;;  %s2928_s7 = inlined_call_operand.vmem [shape: f32[1,32], index: 7, kind: input, shape index: {}]   ;;  %s2929_s8 = inlined_call_operand.vmem [shape: f32[1,32], index: 8, kind: input, shape index: {}]   ;;  %s2930_s9 = inlined_call_operand.vmem [shape: f32[1,32], index: 9, kind: input, shape index: {}]   ;;  %s2931_s10 = inlined_call_operand.vmem [shape: f32[1,32], index: 10, kind: input, shape index: {}]   ;;  %s2932_s11 = inlined_call_operand.<no memory space> [shape: f32[1,1], index: 11, kind: input, shape index: {}]   ;;  %s2933_s12 = inlined_call_operand.vmem [shape: f32[2,4,1], index: 12, kind: output, shape index: {0}]   ;;  %s2934_s13 = inlined_call_operand.hbm [shape: f32[2,4,64], index: 13, kind: output, shape index: {1}]  }
   0x1   :  { %2937 = sst [smem:[#allocation7_spill]] %s2921_s0  ;;  %v19_v0 = vstv %s2932_s11 }
   0x2   :  { %2938 = sst [smem:[#allocation8_spill]] %s2922_s1  ;;  %20 = vst [vmem:[#allocation3] sm:$0x1] %v19_v0 }
   0x3   :  { %2939 = sst [smem:[#allocation9_spill]] %s2923_s2 }
   0x4   :  { %2940 = sst [smem:[#allocation10_spill]] %s2924_s3 }
   0x5   :  { %21 = vsyncpa [#allocation5], 0 }
   0x6   :  { %23 = vsyncpa [#allocation5 + $0x1], 0  ;;  %s2573_s27 = smov 0   ;;  %s2575_s28 = smov 0  }
   0x7   :  { %s2577_s29 = smov 0   ;;  %s2579_s30 = smov 0  }
   0x8 LB: > { %s2594_s11 = sadd.s32 4294967295, %s2490_s30   ;;  %s1983_s14 = sadd.s32 4294967294, %s2490_s30   ;;  %s2490_s30 = sphi %s2579_s30, %s2953_s30   ;;  %s2486_s29 = sphi %s2577_s29, %s2952_s29   ;;  %s2482_s28 = sphi %s2575_s28, %s2951_s28   ;;  %s2478_s27 = sphi %s2573_s27, %s2950_s27  }
   0x9   : > { %s2598_s15 = sadd.s32 1, %s2490_s30   ;;  %s319_s16 = sadd.s32 1, %s2486_s29 }
   0xa   : > { %s316_s17 = ssub.s32 %s2490_s30, %s2598_s15  ;;  %p329_p0 = scmp.ne.s32.totalorder %s2486_s29, %s2482_s28 }
   0xb   : > { %p317_p1 = scmp.eq.s32.totalorder %s316_s17, 0  ;;  %p330_p2 = scmp.eq.s32.totalorder %s2594_s11, 1 }
   0xc   : > { %p335_p3 = scmp.ne.s32.totalorder %s2482_s28, %s2478_s27  ;;  %p336_p4 = scmp.eq.s32.totalorder %s1983_s14, 1 }
   0xd   : > { %s2609_s18 = scalar_select %p317_p1, %s2486_s29, %s319_s16  }
   0xe   : > { %p2611_p5 = por %p330_p2, %p329_p0  ;;  %p2615_p6 = por %p336_p4, %p335_p3 }
   0xf   : > { %p1986_p7 = scmp.ge.s32.totalorder %s2490_s30, 1  ;;  %p395_p8 = scmp.lt.s32.totalorder %s2490_s30, 3 }
  0x11   : > { %p396_p9 = pnand %p1986_p7, %p395_p8 }
  0x12   : > { %s2943_s1 = sld [smem:[#allocation8_spill]] (!%p396_p9)  ;;  %vm478_vm0 = vcmask (!%p396_p9), 1041408   ;;  %p443_p10 = scmp.lt.s32.totalorder (!%p396_p9), %s2594_s11, 1  ;;  %vm2492_vm1 = vmmov (!%p396_p9), 1   ;;  %vm465_vm3 = vcmask (!%p396_p9), 80896   ;;  %v2493_v12 = vmov (!%p396_p9), 0.0|0.0  }
  0x13   : > { %399 = sbr.rel (%p396_p9) target bundleno = 6865 (0x1ad1), region = 68  ;;  %vm2628_vm2 = vmpackc.low (!%p396_p9), %vm478_vm0, %vm2492_vm1  ;;  %s2946_s0 = sld [smem:[#allocation7_spill]] (!%p396_p9)  ;;  %2226 = vmatprep.subr.bf16.mxu0 (!%p396_p9), %v2493_v12  ;;  %v680_v13 = vld [vmem:[%s2925_s4] sm:$0xff] (!%p396_p9)  ;;  %v681_v14 = vld [vmem:[%s2925_s4 + $0x8] sm:$0xff] (!%p396_p9)  ;;  %vm2494_vm4 = vmmov (!%p396_p9), 0   ;;  %v2495_v19 = vmov (!%p396_p9), 0.0  }
  0x14   : > { %s2947_s3 = sld [smem:[#allocation10_spill]] (!%p396_p9)  ;;  %v2660_v15 = vpack.c.bf16 (!%p396_p9), %v681_v14, %v680_v13  ;;  %v682_v16 = vld [vmem:[%s2925_s4 + $0x10] sm:$0xff] (!%p396_p9)  ;;  %v683_v17 = vld [vmem:[%s2925_s4 + $0x18] sm:$0xff] (!%p396_p9)  ;;  %2120 = vmatprep.mubr.msk.f32.mxu0 (!%p396_p9), %vm2494_vm4, %v2495_v19  ;;  %s2948_s2 = sld [smem:[#allocation9_spill]] (!%p396_p9)  ;;  %v2704_v35 = vld [vmem:[%s2926_s5] ss:$0 sm:$0xff] (!%p396_p9) }
  0x15   : > { %v2675_v18 = vpack.c.bf16 (!%p396_p9), %v683_v17, %v682_v16  ;;  %s2496_s16 = smov (!%p396_p9), 32   ;;  %vm787_vm5 = vcmask (!%p396_p9), 257024   ;;  %vm684_vm6 = vcmask (!%p396_p9), 261120   ;;  %vm896_vm7 = vcmask (!%p396_p9), 261124   ;;  %s2949_s21 = smov (!%p396_p9), 64  }
  0x16   : > { %2228 = vmatpush3.bf16.msra.mxu0 (!%p396_p9), %v2660_v15  ;;  %vm1836_vm8 = vcmask (!%p396_p9), 519424   ;;  %s2028_s14 = sshll.u32 (!%p396_p9), %s2594_s11, 6 }
  0x17   : > { %2229 = vmatprep.subr.bf16.mxu0 (!%p396_p9), %v2493_v12  ;;  %s2878_s24 = scalar_lea.hbm (!%p396_p9), %s2934_s13, %s2028_s14 }
  0x18   : > { %v456_v1 = vld [vmem:[%s2943_s1] sm:$0xff] (!%p396_p9)  ;;  %v457_v2 = vld [vmem:[%s2943_s1 + $0x8] sm:$0x3] (!%p396_p9) }
  0x19   : > { %v2214_v3 = vpack.c.bf16 (!%p396_p9), %v457_v2, %v456_v1 }
  0x1a   : > { %s2633_s25 = scalar_select %p443_p10, %s2594_s11, 1  ;;  %v571_v7 = vld [vmem:[%s2947_s3] sm:$0xff]  ;;  %v572_v8 = vld [vmem:[%s2947_s3 + $0x8] sm:$0x3]  ;;  %2231 = vmatpush3.bf16.msra.mxu0 %v2675_v18 }
  0x1b   : > { %2216 = vmatprep.subr.msk.bf16.mxu1 %vm2628_vm2, %v2214_v3  ;;  %v2220_v10 = vpack.c.bf16 %v572_v8, %v571_v7  ;;  %2238 = vmatprep.subr.bf16.mxu0 %v2493_v12  ;;  %v1991_v20 = vld [vmem:[%s2948_s2] ss:$0 sm:$0xff] }
  0x1c   : > { %2219 = vmatpush3.bf16.msk.msra.mxu1 %vm2628_vm2, %v2214_v3  ;;  %s2031_s26 = sshll.u32 %s2633_s25, 5 }
  0x1d   : > { %s447_s17 = scalar_lea.vmem %s2946_s0, %s2031_s26  ;;  %2222 = vmatprep.subr.msk.bf16.mxu1 %vm2628_vm2, %v2220_v10  ;;  %2121 = vmatmul.mubr.f32.vlgmr.msra.gmra.mrb[0].mxu0 %v2495_v19 }
  0x1e   : > { %v452_v5 = vld [vmem:[%s447_s17] sm:$0xff]  ;;  %v453_v6 = vld [vmem:[%s447_s17 + $0x8] sm:$0xff]  ;;  %v454_v9 = vld [vmem:[%s447_s17 + $0x10] sm:$0xff]  ;;  %2240 = vmatpush3.bf16.msra.mxu0 %v2660_v15  ;;  %2142 = vmatprep.mubr.msk.f32.mxu0 %vm2494_vm4, %v2495_v19 }
  0x1f   : > { %2096 = vmatprep.mubr.msk.f32.mxu1 %vm465_vm3, %v452_v5  ;;  %v455_v11 = vld [vmem:[%s447_s17 + $0x18] sm:$0xff]  ;;  %2241 = vmatprep.subr.bf16.mxu0 %v2493_v12  ;;  %s2935_s17 = smov 64  }
  0x20   : > { %2097 = vmatmul.mubr.msk.f32.vlgmr.msra.gmra.mrb[0].mxu1 %vm465_vm3, %v453_v6 }
  0x21   : > { %2099 = vmatprep.mubr.msk.f32.mxu1 %vm465_vm3, %v454_v9  ;;  %2225 = vmatpush3.bf16.msk.msra.mxu1 %vm2628_vm2, %v2220_v10 }
  0x22   : > { %2232 = vmatprep.subr.bf16.mxu1 %v2493_v12  ;;  %2243 = vmatpush3.bf16.msra.mxu0 %v2675_v18 }
  0x23   : > { %2250 = vmatprep.subr.bf16.mxu0 %v2493_v12 }
  0x24   : > { %2100 = vmatmul.mubr.msk.f32.gmra.mrb[2].mxu1 %vm465_vm3, %v455_v11 }
  0xf0   : > { %v754_v31 = vpop.f32.mrb[0].mxu0 }
  0xf1   : > { %v2122_v33 = vpop.f32.mrb[1].mxu0 }
  0xf3   : > { %v2098_v21 = vpop.f32.mrb[0].mxu1 }
  0xf4   : > { %v554_v22 = vadd.f32 %v2098_v21, %v1991_v20  ;;  %v548_v23 = vpop.f32.mrb[1].mxu1 }
  0xf5   : > { %v549_v24 = vadd.f32 %v1991_v20, %v548_v23 }
  0xf7   : > { %2330 = vtanh.f32 %v549_v24  ;;  %v2101_v27 = vpop.f32.mrb[2].mxu1 }
  0xf8   : > { %2332 = vtanh.f32 %v554_v22  ;;  %v564_v28 = vadd.f32 %v2101_v27, %v1991_v20  ;;  %v558_v29 = vpop.f32.mrb[3].mxu1 }
  0xf9   : > { %v559_v30 = vadd.f32 %v1991_v20, %v558_v29 }
  0xfa   : > { %2334 = vtanh.f32 %v564_v28 }
  0xfb   : > { %2336 = vtanh.f32 %v559_v30 }
 0x101   : > { %v2331_v25 = vpop.eup %2330 }
 0x102   : > { %v2333_v26 = vpop.eup %2332  ;;  %2106 = vmatprep.mubr.msk.f32.mxu1 %vm465_vm3, %v2331_v25 }
 0x103   : > { %2107 = vmatmul.mubr.msk.f32.vlgmr.msra.gmra.mrb[4].mxu1 %vm465_vm3, %v2333_v26 }
 0x104   : > { %2234 = vmatpush3.bf16.msra.mxu1 %v2660_v15  ;;  %v2335_v32 = vpop.eup %2334 }
 0x105   : > { %2235 = vmatprep.subr.bf16.mxu1 %v2493_v12  ;;  %v2337_v34 = vpop.eup %2336 }
 0x106   : > { %2109 = vmatprep.mubr.msk.f32.mxu1 %vm465_vm3, %v2337_v34 }
 0x107   : > { %2110 = vmatmul.mubr.msk.f32.gmra.mrb[6].mxu1 %vm465_vm3, %v2335_v32 }
 0x108   : > { %2237 = vmatpush3.bf16.msra.mxu1 %v2675_v18  ;;  %2131 = vmatprep.mubr.msk.f32.mxu1 %vm2494_vm4, %v2495_v19 }
 0x109   : > { %2244 = vmatprep.subr.bf16.mxu1 %v2493_v12 }
 0x1d6   : > { %v2706_v36 = vpop.f32.mrb[4].mxu1 }
 0x1d7   : > { %v661_v37 = vpop.f32.mrb[5].mxu1  ;;  %v667_v13 = vadd.f32 %v2706_v36, %v2704_v35 }
 0x1d8   : > { %v662_v38 = vadd.f32 %v2704_v35, %v661_v37 }
 0x1da   : > { %v758_v39 = vadd.f32 %v754_v31, %v662_v38  ;;  %v2710_v41 = vpop.f32.mrb[6].mxu1 }
 0x1db   : > { %v2712_v42 = vpop.f32.mrb[7].mxu1 }
 0x1dc   : > { %2338 = vtanh.f32 %v758_v39  ;;  %v2003_v43 = vmul.f32 -1.442695, %v758_v39 }
 0x1de   : > { %2340 = vpow2.f32 %v2003_v43 }
 0x1e6   : > { %v2339_v40 = vpop.eup %2338 }
 0x1e7   : > { %768 = vrot.lane.b32.xlu0 %v2339_v40, %s2496_s16 }
 0x1e8   : > { %v2341_v44 = vpop.eup %2340 }
 0x1e9   : > { %v762_v45 = vadd.f32 1.0, %v2341_v44 }
 0x1eb   : > { %2342 = vrcp.f32 %v762_v45 }
 0x1f5   : > { %v2343_v46 = vpop.eup %2342 }
 0x1f6   : > { %v766_v49 = vmul.f32 0.0, %v2343_v46 }
 0x259   : > { %v769_v47 = vpop.permute.xlu0 %768 }
 0x25a   : > { %v771_v48 = vmul.f32 %v2343_v46, %v769_v47 }
 0x25c   : > { %773 = vrot.lane.b32.xlu0 %v771_v48, %s2496_s16 }
 0x2ce   : > { %v774_v50 = vpop.permute.xlu0 %773 }
 0x2cf   : > { %v776_v51 = vadd.f32 %v774_v50, %v766_v49 }
 0x2d1   : > { %2344 = vtanh.f32 %v776_v51  ;;  %v873_v3 = vrot.slane %v776_v51, 4 }
 0x2db   : > { %v2345_v52 = vpop.eup %2344 }
 0x2dc   : > { %779 = vrot.lane.b32.xlu1 %v2345_v52, %s2496_s16 }
 0x34e   : > { %v780_v53 = vpop.permute.xlu1 %779 }
 0x34f   : > { %v782_v54 = vmul.f32 %v2343_v46, %v780_v53 }
 0x351   : > { %784 = vrot.lane.b32.xlu1 %v782_v54, %s2935_s17 }
 0x3c3   : > { %v785_v55 = vpop.permute.xlu1 %784 }
 0x3c4   : > { %788 = vst.msk [vmem:[#allocation2] sm:$0xf] %vm787_vm5, %v785_v55  ;;  %2132 = vmatmul.mubr.msk.f32.vlgmr.msra.gmra.mrb[8].mxu1 %vm684_vm6, %v785_v55 }
 0x3c5   : > { %2246 = vmatpush3.bf16.msra.mxu1 %v2660_v15  ;;  %2153 = vmatprep.mubr.msk.f32.mxu1 %vm2494_vm4, %v2495_v19 }
 0x3c6   : > { %2247 = vmatprep.subr.bf16.mxu1 %v2493_v12 }
 0x3c9   : > { %2249 = vmatpush3.bf16.msra.mxu1 %v2675_v18 }
 0x3ca   : > { %2256 = vmatprep.subr.bf16.mxu1 %v2493_v12 }
 0x497   : > { %v857_v56 = vpop.f32.mrb[8].mxu1 }
 0x498   : > { %v862_v57 = vrot.slane %v857_v56, 4  ;;  %v2133_v58 = vpop.f32.mrb[9].mxu1 }
 0x499   : > { %v672_v58 = vadd.f32 %v2704_v35, %v2712_v42 }
 0x49a   : > { %v864_v59 = vadd.f32 %v862_v57, %v662_v38 }
 0x49c   : > { %2346 = vtanh.f32 %v864_v59  ;;  %v2005_v61 = vmul.f32 -1.442695, %v864_v59 }
 0x49e   : > { %2348 = vpow2.f32 %v2005_v61 }
 0x4a6   : > { %v2347_v60 = vpop.eup %2346 }
 0x4a7   : > { %877 = vrot.lane.b32.xlu0 %v2347_v60, %s2496_s16 }
 0x4a8   : > { %v2349_v62 = vpop.eup %2348 }
 0x4a9   : > { %v868_v63 = vadd.f32 1.0, %v2349_v62 }
 0x4ab   : > { %2350 = vrcp.f32 %v868_v63 }
 0x4b5   : > { %v2351_v0 = vpop.eup %2350 }
 0x4b6   : > { %v875_v4 = vmul.f32 %v2351_v0, %v873_v3 }
 0x519   : > { %v878_v1 = vpop.permute.xlu0 %877 }
 0x51a   : > { %v880_v2 = vmul.f32 %v2351_v0, %v878_v1 }
 0x51c   : > { %882 = vrot.lane.b32.xlu1 %v880_v2, %s2496_s16 }
 0x58e   : > { %v883_v5 = vpop.permute.xlu1 %882 }
 0x58f   : > { %v885_v6 = vadd.f32 %v883_v5, %v875_v4 }
 0x591   : > { %2352 = vtanh.f32 %v885_v6  ;;  %v982_v27 = vrot.slane %v885_v6, 4 }
 0x59b   : > { %v2353_v7 = vpop.eup %2352 }
 0x59c   : > { %888 = vrot.lane.b32.xlu0 %v2353_v7, %s2496_s16 }
 0x60e   : > { %v889_v8 = vpop.permute.xlu0 %888 }
 0x60f   : > { %v2728_v9 = vmul.f32 %v2351_v0, %v889_v8 }
 0x611   : > { %v898_v10 = vrot.slane %v2728_v9, 4 }
 0x613   : > { %899 = vrot.lane.b32.xlu1 %v898_v10, %s2935_s17 }
 0x685   : > { %v900_v11 = vpop.permute.xlu1 %899 }
 0x686   : > { %2143 = vmatmul.mubr.msk.f32.vlgmr.msra.gmra.mrb[2].mxu0 %vm684_vm6, %v900_v11 }
 0x687   : > { %2252 = vmatpush3.bf16.msra.mxu0 %v2660_v15  ;;  %2164 = vmatprep.mubr.msk.f32.mxu0 %vm2494_vm4, %v2495_v19 }
 0x688   : > { %2253 = vmatprep.subr.bf16.mxu0 %v2493_v12 }
 0x68b   : > { %2255 = vmatpush3.bf16.msra.mxu0 %v2675_v18 }
 0x68c   : > { %2262 = vmatprep.subr.bf16.mxu0 %v2493_v12 }
 0x759   : > { %v969_v14 = vpop.f32.mrb[2].mxu0 }
 0x75a   : > { %v973_v16 = vadd.f32 %v969_v14, %v667_v13  ;;  %v2144_v17 = vpop.f32.mrb[3].mxu0 }
 0x75c   : > { %2354 = vtanh.f32 %v973_v16  ;;  %v2007_v21 = vmul.f32 -1.442695, %v973_v16 }
 0x75e   : > { %2356 = vpow2.f32 %v2007_v21 }
 0x766   : > { %v2355_v20 = vpop.eup %2354 }
 0x767   : > { %986 = vrot.lane.b32.xlu0 %v2355_v20, %s2496_s16 }
 0x768   : > { %v2357_v22 = vpop.eup %2356 }
 0x769   : > { %v977_v23 = vadd.f32 1.0, %v2357_v22 }
 0x76b   : > { %2358 = vrcp.f32 %v977_v23 }
 0x775   : > { %v2359_v24 = vpop.eup %2358 }
 0x776   : > { %v984_v28 = vmul.f32 %v2359_v24, %v982_v27 }
 0x7d9   : > { %v987_v25 = vpop.permute.xlu0 %986 }
 0x7da   : > { %v989_v26 = vmul.f32 %v2359_v24, %v987_v25 }
 0x7dc   : > { %991 = vrot.lane.b32.xlu1 %v989_v26, %s2496_s16 }
 0x84e   : > { %v992_v29 = vpop.permute.xlu1 %991 }
 0x84f   : > { %v994_v30 = vadd.f32 %v992_v29, %v984_v28 }
 0x851   : > { %2360 = vtanh.f32 %v994_v30  ;;  %v1090_v49 = vrot.slane %v994_v30, 4 }
 0x85b   : > { %v2361_v31 = vpop.eup %2360 }
 0x85c   : > { %997 = vrot.lane.b32.xlu0 %v2361_v31, %s2496_s16 }
 0x8ce   : > { %v998_v32 = vpop.permute.xlu0 %997 }
 0x8cf   : > { %v1000_v33 = vmul.f32 %v2359_v24, %v998_v32 }
 0x8d1   : > { %1002 = vrot.lane.b32.xlu1 %v1000_v33, %s2935_s17  ;;  %v677_v33 = vadd.f32 %v2710_v41, %v2704_v35 }
 0x943   : > { %v1003_v34 = vpop.permute.xlu1 %1002 }
 0x944   : > { %1005 = vst.msk [vmem:[#allocation2 + $0x8] sm:$0xf] %vm787_vm5, %v1003_v34  ;;  %2154 = vmatmul.mubr.msk.f32.vlgmr.msra.gmra.mrb[10].mxu1 %vm684_vm6, %v1003_v34 }
 0x945   : > { %2258 = vmatpush3.bf16.msra.mxu1 %v2660_v15  ;;  %2175 = vmatprep.mubr.msk.f32.mxu1 %vm2494_vm4, %v2495_v19 }
 0x946   : > { %2259 = vmatprep.subr.bf16.mxu1 %v2493_v12 }
 0x949   : > { %2261 = vmatpush3.bf16.msra.mxu1 %v2675_v18 }
 0x94a   : > { %2268 = vmatprep.subr.bf16.mxu1 %v2493_v12 }
 0xa17   : > { %v1074_v36 = vpop.f32.mrb[10].mxu1 }
 0xa18   : > { %v1079_v37 = vrot.slane %v1074_v36, 4  ;;  %v2155_v38 = vpop.f32.mrb[11].mxu1 }
 0xa1a   : > { %v1081_v39 = vadd.f32 %v1079_v37, %v667_v13 }
 0xa1c   : > { %2362 = vtanh.f32 %v1081_v39  ;;  %v2009_v43 = vmul.f32 -1.442695, %v1081_v39 }
 0xa1e   : > { %2364 = vpow2.f32 %v2009_v43 }
 0xa26   : > { %v2363_v40 = vpop.eup %2362 }
 0xa27   : > { %1094 = vrot.lane.b32.xlu0 %v2363_v40, %s2496_s16 }
 0xa28   : > { %v2365_v44 = vpop.eup %2364 }
 0xa29   : > { %v1085_v45 = vadd.f32 1.0, %v2365_v44 }
 0xa2b   : > { %2366 = vrcp.f32 %v1085_v45 }
 0xa35   : > { %v2367_v46 = vpop.eup %2366 }
 0xa36   : > { %v1092_v50 = vmul.f32 %v2367_v46, %v1090_v49 }
 0xa99   : > { %v1095_v47 = vpop.permute.xlu0 %1094 }
 0xa9a   : > { %v1097_v48 = vmul.f32 %v2367_v46, %v1095_v47 }
 0xa9c   : > { %1099 = vrot.lane.b32.xlu1 %v1097_v48, %s2496_s16 }
 0xb0e   : > { %v1100_v51 = vpop.permute.xlu1 %1099 }
 0xb0f   : > { %v1102_v52 = vadd.f32 %v1100_v51, %v1092_v50 }
 0xb11   : > { %2368 = vtanh.f32 %v1102_v52  ;;  %v1198_v5 = vrot.slane %v1102_v52, 4 }
 0xb1b   : > { %v2369_v53 = vpop.eup %2368 }
 0xb1c   : > { %1105 = vrot.lane.b32.xlu0 %v2369_v53, %s2496_s16 }
 0xb8e   : > { %v1106_v54 = vpop.permute.xlu0 %1105 }
 0xb8f   : > { %v2756_v55 = vmul.f32 %v2367_v46, %v1106_v54 }
 0xb91   : > { %v1114_v56 = vrot.slane %v2756_v55, 4 }
 0xb93   : > { %1115 = vrot.lane.b32.xlu1 %v1114_v56, %s2935_s17 }
 0xc05   : > { %v1116_v57 = vpop.permute.xlu1 %1115 }
 0xc06   : > { %2165 = vmatmul.mubr.msk.f32.vlgmr.msra.gmra.mrb[4].mxu0 %vm684_vm6, %v1116_v57 }
 0xc07   : > { %2264 = vmatpush3.bf16.msra.mxu0 %v2660_v15  ;;  %2186 = vmatprep.mubr.msk.f32.mxu0 %vm2494_vm4, %v2495_v19 }
 0xc08   : > { %2265 = vmatprep.subr.bf16.mxu0 %v2493_v12 }
 0xc0b   : > { %2267 = vmatpush3.bf16.msra.mxu0 %v2675_v18 }
 0xcd9   : > { %v1185_v59 = vpop.f32.mrb[4].mxu0 }
 0xcda   : > { %v1189_v60 = vadd.f32 %v1185_v59, %v672_v58  ;;  %v2166_v61 = vpop.f32.mrb[5].mxu0 }
 0xcdc   : > { %2370 = vtanh.f32 %v1189_v60  ;;  %v2011_v63 = vmul.f32 -1.442695, %v1189_v60 }
 0xcde   : > { %2372 = vpow2.f32 %v2011_v63 }
 0xce6   : > { %v2371_v62 = vpop.eup %2370 }
 0xce7   : > { %1202 = vrot.lane.b32.xlu0 %v2371_v62, %s2496_s16 }
 0xce8   : > { %v2373_v0 = vpop.eup %2372 }
 0xce9   : > { %v1193_v1 = vadd.f32 1.0, %v2373_v0 }
 0xceb   : > { %2374 = vrcp.f32 %v1193_v1 }
 0xcf5   : > { %v2375_v2 = vpop.eup %2374 }
 0xcf6   : > { %v1200_v6 = vmul.f32 %v2375_v2, %v1198_v5  ;;  %v1550_v5 = vld [vmem:[%s2927_s6] sm:$0xff] }
 0xd59   : > { %v1203_v3 = vpop.permute.xlu0 %1202 }
 0xd5a   : > { %v1205_v4 = vmul.f32 %v2375_v2, %v1203_v3 }
 0xd5c   : > { %1207 = vrot.lane.b32.xlu1 %v1205_v4, %s2496_s16 }
 0xdce   : > { %v1208_v42 = vpop.permute.xlu1 %1207 }
 0xdcf   : > { %v1210_v7 = vadd.f32 %v1208_v42, %v1200_v6  ;;  %v1551_v6 = vld [vmem:[%s2927_s6 + $0x8] sm:$0xff] }
 0xdd0   : > { %v2274_v42 = vpack.c.bf16 %v1551_v6, %v1550_v5 }
 0xdd1   : > { %2376 = vtanh.f32 %v1210_v7 }
 0xdd2   : > { %2275 = vmatprep.subr.bf16.mxu0 %v2274_v42 }
 0xddb   : > { %v2377_v8 = vpop.eup %2376 }
 0xddc   : > { %1213 = vrot.lane.b32.xlu0 %v2377_v8, %s2496_s16  ;;  %v1553_v8 = vld [vmem:[%s2927_s6 + $0x18] sm:$0xff] }
 0xe4e   : > { %v1214_v10 = vpop.permute.xlu0 %1213 }
 0xe4f   : > { %v1216_v11 = vmul.f32 %v2375_v2, %v1214_v10 }
 0xe51   : > { %1218 = vrot.lane.b32.xlu1 %v1216_v11, %s2935_s17 }
 0xec3   : > { %v1219_v13 = vpop.permute.xlu1 %1218 }
 0xec4   : > { %1221 = vst.msk [vmem:[#allocation2 + $0x10] sm:$0xf] %vm787_vm5, %v1219_v13  ;;  %2176 = vmatmul.mubr.msk.f32.vlgmr.msra.gmra.mrb[12].mxu1 %vm684_vm6, %v1219_v13 }
 0xec5   : > { %2270 = vmatpush3.bf16.msra.mxu1 %v2660_v15  ;;  %2197 = vmatprep.mubr.msk.f32.mxu1 %vm2494_vm4, %v2495_v19 }
 0xec6   : > { %2271 = vmatprep.subr.bf16.mxu1 %v2493_v12  ;;  %v1306_v12 = vrot.slane %v1210_v7, 4 }
 0xec9   : > { %2273 = vmatpush3.bf16.msra.mxu1 %v2675_v18 }
 0xf97   : > { %v1290_v14 = vpop.f32.mrb[12].mxu1 }
 0xf98   : > { %v1295_v16 = vrot.slane %v1290_v14, 4  ;;  %v2177_v17 = vpop.f32.mrb[13].mxu1 }
 0xf9a   : > { %v1297_v20 = vadd.f32 %v1295_v16, %v672_v58 }
 0xf9c   : > { %2378 = vtanh.f32 %v1297_v20  ;;  %v2013_v22 = vmul.f32 -1.442695, %v1297_v20 }
 0xf9e   : > { %2380 = vpow2.f32 %v2013_v22 }
 0xfa6   : > { %v2379_v21 = vpop.eup %2378 }
 0xfa7   : > { %1310 = vrot.lane.b32.xlu0 %v2379_v21, %s2496_s16 }
 0xfa8   : > { %v2381_v23 = vpop.eup %2380 }
 0xfa9   : > { %v1301_v24 = vadd.f32 1.0, %v2381_v23 }
 0xfab   : > { %2382 = vrcp.f32 %v1301_v24  ;;  %v2018_v24 = vld [vmem:[%s2928_s7] ss:$0 sm:$0xff] }
 0xfb5   : > { %v2383_v15 = vpop.eup %2382 }
 0xfb6   : > { %v1308_v18 = vmul.f32 %v2383_v15, %v1306_v12 }
0x1019   : > { %v1311_v25 = vpop.permute.xlu0 %1310 }
0x101a   : > { %v1313_v19 = vmul.f32 %v2383_v15, %v1311_v25 }
0x101c   : > { %1315 = vrot.lane.b32.xlu1 %v1313_v19, %s2496_s16 }
0x108e   : > { %v1316_v26 = vpop.permute.xlu1 %1315 }
0x108f   : > { %v1318_v27 = vadd.f32 %v1316_v26, %v1308_v18  ;;  %v2023_v18 = vld [vmem:[%s2929_s8] ss:$0 sm:$0xff] }
0x1091   : > { %2384 = vtanh.f32 %v1318_v27  ;;  %v1414_v47 = vrot.slane %v1318_v27, 4 }
0x109b   : > { %v2385_v28 = vpop.eup %2384 }
0x109c   : > { %1321 = vrot.lane.b32.xlu0 %v2385_v28, %s2496_s16 }
0x110e   : > { %v1322_v29 = vpop.permute.xlu0 %1321 }
0x110f   : > { %v1324_v30 = vmul.f32 %v2383_v15, %v1322_v29 }
0x1111   : > { %v1330_v31 = vrot.slane %v1324_v30, 4 }
0x1113   : > { %1331 = vrot.lane.b32.xlu1 %v1330_v31, %s2935_s17 }
0x1185   : > { %v1332_v32 = vpop.permute.xlu1 %1331 }
0x1186   : > { %2187 = vmatmul.mubr.msk.f32.vlgmr.msra.gmra.mrb[6].mxu0 %vm684_vm6, %v1332_v32 }
0x1187   : > { %2277 = vmatpush3.bf16.msra.mxu0 %v2274_v42 }
0x1259   : > { %v1401_v34 = vpop.f32.mrb[6].mxu0 }
0x125a   : > { %v1405_v36 = vadd.f32 %v1401_v34, %v677_v33  ;;  %v2188_v37 = vpop.f32.mrb[7].mxu0 }
0x125c   : > { %2386 = vtanh.f32 %v1405_v36  ;;  %v2015_v39 = vmul.f32 -1.442695, %v1405_v36 }
0x125e   : > { %2388 = vpow2.f32 %v2015_v39 }
0x1266   : > { %v2387_v38 = vpop.eup %2386 }
0x1267   : > { %1418 = vrot.lane.b32.xlu0 %v2387_v38, %s2496_s16 }
0x1268   : > { %v2389_v40 = vpop.eup %2388 }
0x1269   : > { %v1409_v43 = vadd.f32 1.0, %v2389_v40 }
0x126b   : > { %2390 = vrcp.f32 %v1409_v43 }
0x1275   : > { %v2391_v44 = vpop.eup %2390 }
0x1276   : > { %v1416_v48 = vmul.f32 %v2391_v44, %v1414_v47 }
0x12d9   : > { %v1419_v45 = vpop.permute.xlu0 %1418 }
0x12da   : > { %v1421_v46 = vmul.f32 %v2391_v44, %v1419_v45  ;;  %v2498_v45 = vmov 0  }
0x12db   : > { %2329 = vset.pattern.permute.xlu1 %v2498_v45  ;;  %2328 = vset.pattern.permute.xlu0 %v2498_v45 }
0x12dc   : > { %1423 = vrot.lane.b32.xlu1 %v1421_v46, %s2496_s16 }
0x134e   : > { %v1424_v35 = vpop.permute.xlu1 %1423 }
0x134f   : > { %v1426_v41 = vadd.f32 %v1424_v35, %v1416_v48 }
0x1351   : > { %2392 = vtanh.f32 %v1426_v41  ;;  %v1522_v1 = vrot.slane %v1426_v41, 4 }
0x135b   : > { %v2393_v49 = vpop.eup %2392 }
0x135c   : > { %1429 = vrot.lane.b32.xlu0 %v2393_v49, %s2496_s16 }
0x13ce   : > { %v1430_v50 = vpop.permute.xlu0 %1429 }
0x13cf   : > { %v1432_v51 = vmul.f32 %v2391_v44, %v1430_v50 }
0x13d1   : > { %1434 = vrot.lane.b32.xlu1 %v1432_v51, %s2935_s17 }
0x1443   : > { %v1435_v52 = vpop.permute.xlu1 %1434 }
0x1444   : > { %1437 = vst.msk [vmem:[#allocation2 + $0x18] sm:$0xf] %vm787_vm5, %v1435_v52  ;;  %2198 = vmatmul.mubr.msk.f32.vlgmr.msra.gmra.mrb[14].mxu1 %vm684_vm6, %v1435_v52 }
0x1517   : > { %v1506_v53 = vpop.f32.mrb[14].mxu1 }
0x1518   : > { %v1511_v54 = vrot.slane %v1506_v53, 4  ;;  %v2199_v56 = vpop.f32.mrb[15].mxu1 }
0x151a   : > { %v1513_v57 = vadd.f32 %v1511_v54, %v677_v33 }
0x151c   : > { %2394 = vtanh.f32 %v1513_v57  ;;  %v2017_v59 = vmul.f32 -1.442695, %v1513_v57 }
0x151e   : > { %2396 = vpow2.f32 %v2017_v59 }
0x1526   : > { %v2395_v58 = vpop.eup %2394 }
0x1527   : > { %1526 = vrot.lane.b32.xlu0 %v2395_v58, %s2496_s16 }
0x1528   : > { %v2397_v60 = vpop.eup %2396 }
0x1529   : > { %v1517_v61 = vadd.f32 1.0, %v2397_v60 }
0x152b   : > { %2398 = vrcp.f32 %v1517_v61 }
0x1535   : > { %v2399_v62 = vpop.eup %2398 }
0x1536   : > { %v1524_v2 = vmul.f32 %v2399_v62, %v1522_v1 }
0x1599   : > { %v1527_v63 = vpop.permute.xlu0 %1526 }
0x159a   : > { %v1529_v0 = vmul.f32 %v2399_v62, %v1527_v63 }
0x159c   : > { %1531 = vrot.lane.b32.xlu1 %v1529_v0, %s2496_s16 }
0x15a0   : > { %893 = vrot.lane.b32.xlu1 %v2728_v9, %s2935_s17  ;;  %v1552_v9 = vld [vmem:[%s2927_s6 + $0x10] sm:$0xff] }
0x15a1   : > { %v2278_v10 = vpack.c.bf16 %v1553_v8, %v1552_v9 }
0x15a3   : > { %2279 = vmatprep.subr.bf16.mxu0 %v2278_v10 }
0x15a4   : > { %1326 = vrot.lane.b32.xlu1 %v1324_v30, %s2935_s17  ;;  %2281 = vmatpush3.bf16.msra.mxu0 %v2278_v10  ;;  %s440_s17 = sand.u32 1, %s2482_s28  }
0x15a5   : > { %s1987_s0 = sshll.u32 %s440_s17, 2  ;;  %s1884_s1 = scalar_lea.sflag [#allocation5], %s440_s17 }
0x15a6   : > { %s2835_s22 = scalar_lea.vmem [#allocation4], %s1987_s0 }
0x15a7   : > { %s1900_s26 = sshll.u32 %s2835_s22, 4  ;;  %s1901_s26 = int_to_ptr.vmem [resolvable:$true] %s1900_s26 }
0x160e   : > { %v1532_v3 = vpop.permute.xlu1 %1531 }
0x160f   : > { %v1534_v4 = vadd.f32 %v1532_v3, %v1524_v2 }
0x1611   : > { %2400 = vtanh.f32 %v1534_v4 }
0x1612   : > { %v894_v7 = vpop.permute.xlu1 %893 }
0x1613   : > { %897 = vst.msk [vmem:[#allocation2] sm:$0xf0] %vm896_vm7, %v894_v7 }
0x1616   : > { %v1327_v11 = vpop.permute.xlu1 %1326 }
0x1617   : > { %1329 = vst.msk [vmem:[#allocation2 + $0x10] sm:$0xf0] %vm896_vm7, %v1327_v11 }
0x161a   : > { %v2811_v13 = vld [vmem:[#allocation2] sm:$0xff] }
0x161b   : > { %v2401_v14 = vpop.eup %2400  ;;  %2208 = vmatprep.mubr.msk.f32.mxu0 %vm684_vm6, %v2811_v13 }
0x161c   : > { %1537 = vrot.lane.b32.xlu0 %v2401_v14, %s2496_s16 }
0x161e   : > { %v2827_v22 = vld [vmem:[#allocation2 + $0x10] sm:$0xff] }
0x1620   : > { %1110 = vrot.lane.b32.xlu0 %v2756_v55, %s2949_s21 }
0x168e   : > { %v1538_v16 = vpop.permute.xlu0 %1537 }
0x168f   : > { %v2818_v17 = vmul.f32 %v2399_v62, %v1538_v16 }
0x1691   : > { %1542 = vrot.lane.b32.xlu0 %v2818_v17, %s2949_s21 }
0x1692   : > { %v1111_v20 = vpop.permute.xlu0 %1110 }
0x1693   : > { %1113 = vst.msk [vmem:[#allocation2 + $0x8] sm:$0xf0] %vm896_vm7, %v1111_v20 }
0x169a   : > { %v2823_v21 = vld [vmem:[#allocation2 + $0x8] sm:$0xff] }
0x169b   : > { %2209 = vmatmul.mubr.msk.f32.vlgmr.msra.gmra.mrb[8].mxu0 %vm684_vm6, %v2823_v21 }
0x169c   : > { %2211 = vmatprep.mubr.msk.f32.mxu0 %vm684_vm6, %v2827_v22 }
0x1703   : > { %v1543_v55 = vpop.permute.xlu0 %1542 }
0x1704   : > { %1545 = vst.msk [vmem:[#allocation2 + $0x18] sm:$0xf0] %vm896_vm7, %v1543_v55  ;;  %1831 = vst.msk [vmem:[%s2835_s22 - $0x4] sm:$0xf0] %vm896_vm7, %v1543_v55 }
0x170b   : > { %v2839_v23 = vld [vmem:[#allocation2 + $0x18] sm:$0xff] }
0x170c   : > { %2212 = vmatmul.mubr.msk.f32.gmra.mrb[10].mxu0 %vm684_vm6, %v2839_v23 }
0x176e   : > { %v2210_v15 = vpop.f32.mrb[8].mxu0 }
0x176f   : > { %v1645_v25 = vadd.f32 %v2210_v15, %v2018_v24  ;;  %v1639_v19 = vpop.f32.mrb[9].mxu0 }
0x1770   : > { %v1640_v12 = vadd.f32 %v2018_v24, %v1639_v19 }
0x1771   : > { %2402 = vtanh.f32 %v1645_v25 }
0x1772   : > { %2404 = vtanh.f32 %v1640_v12 }
0x177b   : > { %v2403_v26 = vpop.eup %2402 }
0x177c   : > { %v2405_v27 = vpop.eup %2404  ;;  %v1670_v28 = vmul.f32 %v2403_v26, %v2023_v18 }
0x177d   : > { %v1669_v29 = vmul.f32 %v2405_v27, %v2023_v18 }
0x177e   : > { %v1676_v30 = vsel %vm684_vm6, %v1670_v28, 0.0 }
0x177f   : > { %1677 = vadd.xlane.f32.xlu0 %v1676_v30  ;;  %v1673_v31 = vsel %vm684_vm6, %v1669_v29, 0.0 }
0x1780   : > { %1674 = vadd.xlane.f32.xlu1 %v1673_v31 }
0x17df   : > { %v2213_v32 = vpop.f32.mrb[10].mxu0 }
0x17e0   : > { %v1655_v33 = vadd.f32 %v2213_v32, %v2018_v24  ;;  %v1649_v34 = vpop.f32.mrb[11].mxu0 }
0x17e1   : > { %v1650_v36 = vadd.f32 %v2018_v24, %v1649_v34 }
0x17e2   : > { %2406 = vtanh.f32 %v1655_v33 }
0x17e3   : > { %2408 = vtanh.f32 %v1650_v36 }
0x17ec   : > { %v2407_v37 = vpop.eup %2406 }
0x17ed   : > { %v2409_v38 = vpop.eup %2408  ;;  %v1672_v39 = vmul.f32 %v2407_v37, %v2023_v18 }
0x17ee   : > { %v1671_v40 = vmul.f32 %v2409_v38, %v2023_v18 }
0x17ef   : > { %v1682_v43 = vsel %vm684_vm6, %v1672_v39, 0.0 }
0x17f0   : > { %1683 = vadd.xlane.f32.xlu1 %v1682_v43  ;;  %v1679_v44 = vsel %vm684_vm6, %v1671_v40, 0.0 }
0x17f1   : > { %1680 = vadd.xlane.f32.xlu0 %v1679_v44 }
0x180c   : > { %v1678_v35 = vpop.xlane.xlu0 %1677 }
0x180d   : > { %v1675_v46 = vpop.xlane.xlu1 %1674  ;;  %v1691_v49 = vrot.slane %v1678_v35, 4 }
0x180e   : > { %v1686_v47 = vrot.slane %v1675_v46, 4 }
0x1810   : > { %v1688_v48 = vmax.f32 %v1675_v46, %v1686_v47 }
0x1812   : > { %v1689_v41 = vmax.f32 %v1688_v48, %v1678_v35  ;;  %v2024_v48 = vld [vmem:[%s2930_s9] ss:$0 sm:$0xff] }
0x1814   : > { %v1693_v50 = vmax.f32 %v1689_v41, %v1691_v49 }
0x187d   : > { %v1684_v54 = vpop.xlane.xlu1 %1683 }
0x187e   : > { %v1681_v51 = vpop.xlane.xlu0 %1680  ;;  %v1701_v57 = vrot.slane %v1684_v54, 4 }
0x187f   : > { %v1694_v52 = vmax.f32 %v1693_v50, %v1681_v51  ;;  %v1696_v53 = vrot.slane %v1681_v51, 4 }
0x1881   : > { %v1698_v56 = vmax.f32 %v1694_v52, %v1696_v53 }
0x1883   : > { %v1699_v58 = vmax.f32 %v1698_v56, %v1684_v54 }
0x1885   : > { %v1703_v59 = vmax.f32 %v1699_v58, %v1701_v57 }
0x1887   : > { %v1708_v60 = vrot.slane %v1703_v59, 4  ;;  %v1704_v63 = vsub.f32 %v1675_v46, %v1703_v59  ;;  %v1713_v1 = vsub.f32 %v1678_v35, %v1703_v59  ;;  %v1719_v6 = vsub.f32 %v1681_v51, %v1703_v59 }
0x1888   : > { %v1725_v8 = vsub.f32 %v1684_v54, %v1703_v59 }
0x1889   : > { %v1710_v61 = vsub.f32 %v1675_v46, %v1708_v60  ;;  %v1716_v62 = vsub.f32 %v1678_v35, %v1708_v60  ;;  %v1722_v3 = vsub.f32 %v1681_v51, %v1708_v60  ;;  %v1705_v4 = vmul.f32 1.442695, %v1704_v63 }
0x188a   : > { %v1714_v5 = vmul.f32 1.442695, %v1713_v1  ;;  %v1728_v7 = vsub.f32 %v1684_v54, %v1708_v60  ;;  %v1720_v9 = vmul.f32 1.442695, %v1719_v6  ;;  %v1726_v14 = vmul.f32 1.442695, %v1725_v8 }
0x188b   : > { %v1711_v0 = vmul.f32 1.442695, %v1710_v61  ;;  %v1717_v2 = vmul.f32 1.442695, %v1716_v62  ;;  %v1723_v42 = vmul.f32 1.442695, %v1722_v3 }
0x188c   : > { %v1729_v10 = vmul.f32 1.442695, %v1728_v7 }
0x188d   : > { %2410 = vpow2.f32 %v1711_v0 }
0x188e   : > { %2412 = vpow2.f32 %v1717_v2 }
0x188f   : > { %2414 = vpow2.f32 %v1705_v4 }
0x1890   : > { %2416 = vpow2.f32 %v1714_v5 }
0x1891   : > { %2418 = vpow2.f32 %v1723_v42 }
0x1892   : > { %2420 = vpow2.f32 %v1720_v9 }
0x1893   : > { %2422 = vpow2.f32 %v1729_v10 }
0x1894   : > { %2424 = vpow2.f32 %v1726_v14 }
0x1897   : > { %v2411_v11 = vpop.eup %2410 }
0x1898   : > { %v1732_v16 = vrot.slane %v2411_v11, 4  ;;  %v2413_v20 = vpop.eup %2412 }
0x1899   : > { %v2415_v55 = vpop.eup %2414  ;;  %v1737_v19 = vrot.slane %v2413_v20, 4 }
0x189a   : > { %v1734_v24 = vadd.f32 %v2415_v55, %v1732_v16  ;;  %v2417_v15 = vpop.eup %2416 }
0x189b   : > { %v2419_v12 = vpop.eup %2418 }
0x189c   : > { %v1735_v25 = vadd.f32 %v2417_v15, %v1734_v24  ;;  %v2421_v26 = vpop.eup %2420  ;;  %v1742_v27 = vrot.slane %v2419_v12, 4 }
0x189d   : > { %v2423_v29 = vpop.eup %2422 }
0x189e   : > { %v1739_v18 = vadd.f32 %v1737_v19, %v1735_v25  ;;  %v2425_v31 = vpop.eup %2424  ;;  %v1747_v32 = vrot.slane %v2423_v29, 4 }
0x18a0   : > { %v1740_v28 = vadd.f32 %v2421_v26, %v1739_v18 }
0x18a2   : > { %v1744_v30 = vadd.f32 %v1742_v27, %v1740_v28 }
0x18a4   : > { %v1745_v33 = vadd.f32 %v2425_v31, %v1744_v30 }
0x18a6   : > { %v1749_v34 = vadd.f32 %v1747_v32, %v1745_v33 }
0x18a8   : > { %2426 = vrcp.f32 %v1749_v34 }
0x18b2   : > { %v2427_v36 = vpop.eup %2426 }
0x18b3   : > { %v1752_v37 = vmul.f32 %v2427_v36, %v2415_v55  ;;  %v1761_v38 = vrot.slane %v2427_v36, 4  ;;  %v1774_v40 = vmul.f32 %v2427_v36, %v2417_v15  ;;  %v1793_v43 = vmul.f32 %v2427_v36, %v2421_v26 }
0x18b4   : > { %v1812_v44 = vmul.f32 %v2427_v36, %v2425_v31 }
0x18b5   : > { %1755 = vperm.xlu1 %2329, %v1752_v37   ;;  %v1763_v39 = vmul.f32 %v2411_v11, %v1761_v38  ;;  %v1782_v45 = vmul.f32 %v2413_v20, %v1761_v38  ;;  %v1801_v46 = vmul.f32 %v2419_v12, %v1761_v38  ;;  %v1820_v47 = vmul.f32 %v2423_v29, %v1761_v38 }
0x18b7   : > { %1766 = vperm.xlu0 %2328, %v1763_v39  }
0x18b9   : > { %1777 = vperm.xlu1 %2329, %v1774_v40  }
0x18bd   : > { %1796 = vperm.xlu1 %2329, %v1793_v43  }
0x18c1   : > { %1815 = vperm.xlu1 %2329, %v1812_v44  }
0x18c5   : > { %1785 = vperm.xlu1 %2329, %v1782_v45  }
0x18c9   : > { %1804 = vperm.xlu1 %2329, %v1801_v46  }
0x18cd   : > { %1823 = vperm.xlu1 %2329, %v1820_v47  }
0x18d1   : > { %1844 = vrot.lane.b32.xlu1 %v2024_v48, %s2949_s21 }
0x1934   : > { %v1756_v35 = vpop.permute.xlu1 %1755 }
0x1935   : > { %v1758_v54 = vmul.f32 %v1756_v35, %v2811_v13 }
0x1936   : > { %v1767_v41 = vpop.permute.xlu0 %1766 }
0x1937   : > { %v1769_v50 = vmul.f32 %v1767_v41, %v2811_v13 }
0x1938   : > { %v1778_v49 = vpop.permute.xlu1 %1777 }
0x1939   : > { %v1771_v52 = vrot.slane %v1769_v50, 4  ;;  %v1780_v58 = vmul.f32 %v1778_v49, %v2823_v21 }
0x193b   : > { %v1773_v56 = vadd.f32 %v1771_v52, %v1758_v54 }
0x193c   : > { %v1797_v51 = vpop.permute.xlu1 %1796 }
0x193d   : > { %v1781_v60 = vadd.f32 %v1780_v58, %v1773_v56  ;;  %v1799_v63 = vmul.f32 %v1797_v51, %v2827_v22 }
0x1940   : > { %v1816_v53 = vpop.permute.xlu1 %1815 }
0x1941   : > { %v1818_v5 = vmul.f32 %v1816_v53, %v2839_v23 }
0x1944   : > { %v1786_v57 = vpop.permute.xlu1 %1785 }
0x1945   : > { %v1788_v59 = vmul.f32 %v1786_v57, %v2823_v21  ;;  %v2025_v21 = vld [vmem:[%s2931_s10] ss:$0 sm:$0xff] }
0x1947   : > { %v1790_v61 = vrot.slane %v1788_v59, 4 }
0x1948   : > { %v1805_v62 = vpop.permute.xlu1 %1804 }
0x1949   : > { %v1792_v0 = vadd.f32 %v1790_v61, %v1781_v60  ;;  %v1807_v1 = vmul.f32 %v1805_v62, %v2827_v22 }
0x194b   : > { %v1800_v2 = vadd.f32 %v1799_v63, %v1792_v0  ;;  %v1809_v3 = vrot.slane %v1807_v1, 4 }
0x194c   : > { %v1824_v4 = vpop.permute.xlu1 %1823 }
0x194d   : > { %v1811_v13 = vadd.f32 %v1809_v3, %v1800_v2  ;;  %v1826_v6 = vmul.f32 %v1824_v4, %v2839_v23 }
0x194f   : > { %v1819_v42 = vadd.f32 %v1818_v5, %v1811_v13  ;;  %v1828_v7 = vrot.slane %v1826_v6, 4 }
0x1950   : > { %v1845_v22 = vpop.permute.xlu1 %1844 }
0x1951   : > { %v1830_v9 = vadd.f32 %v1828_v7, %v1819_v42  ;;  %v1847_v11 = vmul.f32 %v1845_v22, %v2818_v17 }
0x1953   : > { %v1855_v8 = vmul.f32 %v2025_v21, %v1830_v9 }
0x1955   : > { %v1857_v10 = vrot.slane %v1855_v8, 4 }
0x1957   : > { %1858 = vrot.lane.b32.xlu0 %v1857_v10, %s2949_s21 }
0x19c9   : > { %v1859_v14 = vpop.permute.xlu0 %1858 }
0x19ca   : > { %v1861_v23 = vadd.f32 %v1859_v14, %v1847_v11 }
0x19cc   : > { %1863 = vrot.lane.b32.xlu1 %v1861_v23, %s2949_s21  ;;  %s2428_s21 = scalar_lea.vmem %s1901_s26, 64 }
0x19cd   : > { %p2429_p11 = scmp.ne.s32.totalorder %s1901_s26, %s2428_s21 }
0x19cf   : > { %p2430_p12 = pnand %p2429_p11, %p2611_p5 }
0x19d0   : > { %1833 = vrot.lane.b32.xlu1 %v1830_v9, %s2496_s16  ;;  %s2499_s16 = smov [#allocation4]  }
0x19d1   : > { %p2431_p13 = pneg %p2430_p12  ;;  %s2432_s2 = sshll.u32 %s2499_s16, 4  ;;  %s2433_s2 = int_to_ptr.vmem [resolvable:$false] %s2432_s2 }
0x19d2   : > { %s2434_s3 = scalar_lea.vmem %s2433_s2, 128  ;;  %p2435_p0 = scmp.lt.s32.totalorder %s1901_s26, %s2433_s2 }
0x19d3   : > { %p2436_p1 = scmp.lt.s32.totalorder %s2434_s3, %s2428_s21 }
0x19d5   : > { %p2437_p2 = por %p2436_p1, %p2435_p0 }
0x19d7   : > { %p2438_p3 = pnand %p2437_p2, %p2431_p13 }
0x1a3e   : > { %v1864_v16 = vpop.permute.xlu1 %1863 }
0x1a3f   : > { %v1866_v20 = vsel %vm896_vm7, %v1864_v16, 0.0 }
0x1a40   : > { %1867 = vadd.xlane.f32.xlu0 %v1866_v20 }
0x1a42   : > { %v1834_v55 = vpop.permute.xlu1 %1833 }
0x1a43   : > { %1837 = vst.msk [vmem:[%s2835_s22] sm:$0xf] %vm1836_vm8, %v1834_v55 }
0x1a44   : > { %2441 = shalt.err (!%p2438_p3)
}
0x1a45   : > { %s2442_s11 = scalar_lea.hbm %s2878_s24, 64  ;;  %s2446_s14 = scalar_lea.hbm %s2934_s13, 128 }
0x1a46   : > { %p2443_p4 = scmp.ne.s32.totalorder %s2878_s24, %s2442_s11  ;;  %p2447_p9 = scmp.lt.u32.totalorder %s2878_s24, %s2934_s13 }
0x1a47   : > { %p2448_p10 = scmp.lt.u32.totalorder %s2446_s14, %s2442_s11  ;;  %p2450_p12 = scmp.lt.u32.totalorder %s2442_s11, %s2878_s24 }
0x1a48   : > { %p2444_p7 = pnand %p2443_p4, %p2611_p5 }
0x1a49   : > { %p2449_p11 = por %p2448_p10, %p2447_p9 }
0x1a4a   : > { %p2445_p8 = pneg %p2444_p7 }
0x1a4b   : > { %p2451_p13 = por %p2450_p12, %p2449_p11 }
0x1a4d   : > { %p2452_p0 = pnand %p2451_p13, %p2445_p8 }
0x1a4f   : > { %2455 = shalt.err (!%p2452_p0)
}
0x1a50   : > { %2282 = dma.vmem_to_hbm [thread:$0]  (%p2611_p5), %s1901_s26, 64, %s2878_s24, %s1884_s1   ;;  %v2026_v17 = vld [vmem:[#allocation3] ss:$0 sm:$0xff]  ;;  %vm1877_vm9 = vcmask 7172  }
0x1a51   : > { %s1990_s3 = sshll.u32 %s2633_s25, 2 }
0x1a52   : > { %s451_s16 = scalar_lea.vmem %s2933_s12, %s1990_s3 }
0x1acd   : > { %v1868_v24 = vpop.xlane.xlu0 %1867 }
0x1ace   : > { %v1876_v15 = vadd.f32 %v2026_v17, %v1868_v24 }
0x1ad0   : > { %1878 = vst.msk [vmem:[%s451_s16 - $0x4] sm:$0xf0] %vm1877_vm9, %v1876_v15 }
0x1ad1 PF: > { %p2288_p1 = scmp.ge.s32.totalorder %s2490_s30, 2  ;;  %s1919_s11 = sand.u32 1, %s2478_s27  }
0x1ad2   : > { %s1920_s19 = scalar_lea.sflag [#allocation5], %s1919_s11 }
0x1ad3   : > { %p2285_p2 = pnand %p2288_p1, %p2615_p6 }
0x1ad5   : > { %2473 = dma.done.wait (!%p2285_p2), %s1920_s19, 64  }
0x1ad6   : > { %2475 = vsyncadd (!%p2285_p2), %s1920_s19, 4294967232  ;;  %p26_p5 = scmp.ge.s32.totalorder %s2598_s15, 4   ;;  %s2950_s27 = smov %s2482_s28 }
0x1ad7   : > { %s2951_s28 = smov %s2486_s29  ;;  %s2952_s29 = smov %s2609_s18 }
0x1ad8   : > { %s2953_s30 = smov %s2598_s15  ;;  %28 = sbr.rel (!%p26_p5) target bundleno = 8 (0x8), region = 115 }
0x1adf   :  { %1925 = vsyncpa [#allocation5], 1 }
0x1ae0   :  { %1927 = vsyncpa [#allocation5 + $0x1], 1 }

</bundles_post_ra>
